<compile_context>
chip_gen: v6e
topology: v6e:2x2x1
jax: 0.10.0
libtpu: 0.0.40
codegen_flags: <defaults>
</compile_context>

<pallas_src>
import functools

import jax
import jax.numpy as jnp
from jax.experimental import pallas as pl
from jax.experimental.pallas import tpu as pltpu

_LANE = 128
_VMEM_LIMIT_BYTES = 32 * 1024 * 1024      # safe scoped limit on v5e/v6e/v7x
_RESIDENT_XW_BYTES = 8 * 1024 * 1024      # keep XW VMEM-resident only below this (v7x-safe)


# ---------------------------------------------------------------------------
# helpers
# ---------------------------------------------------------------------------
def _round_up(x, m):
    return ((x + m - 1) // m) * m


def _pick_tile(n_pad):
    """Adjacency row/col tile. Prefer >=2 row steps so the v7x megacore
    'parallel' axis has work for both TensorCores."""
    for t in (512, 256, 128):
        if n_pad % t == 0 and n_pad // t >= 2:
            return t
    for t in (512, 256, 128):
        if n_pad % t == 0:
            return t
    return n_pad


def _pick_k_tile(f_pad):
    if f_pad <= 1024:
        return f_pad
    for t in (1024, 512, 256, 128):
        if f_pad % t == 0:
            return t
    return f_pad


def _pad2(a, rows, cols):
    return jnp.pad(a, ((0, rows - a.shape[0]), (0, cols - a.shape[1])))


def _compiler_params(sem):
    return pltpu.CompilerParams(dimension_semantics=sem,
                                vmem_limit_bytes=_VMEM_LIMIT_BYTES)


# ---------------------------------------------------------------------------
# X @ W pre-pass (small), optional dinv row-scale epilogue, bf16 output
# ---------------------------------------------------------------------------
def _xw_kernel(x_ref, w_ref, o_ref, acc_ref):
    k = pl.program_id(1)

    @pl.when(k == 0)
    def _():
        acc_ref[...] = jnp.zeros_like(acc_ref)

    acc_ref[...] += jnp.dot(x_ref[...].astype(jnp.bfloat16),
                            w_ref[...].astype(jnp.bfloat16),
                            preferred_element_type=jnp.float32)

    @pl.when(k == pl.num_programs(1) - 1)
    def _():
        o_ref[...] = acc_ref[...].astype(o_ref.dtype)


def _xw_scaled_kernel(x_ref, w_ref, s_ref, o_ref, acc_ref):
    k = pl.program_id(1)

    @pl.when(k == 0)
    def _():
        acc_ref[...] = jnp.zeros_like(acc_ref)

    acc_ref[...] += jnp.dot(x_ref[...].astype(jnp.bfloat16),
                            w_ref[...].astype(jnp.bfloat16),
                            preferred_element_type=jnp.float32)

    @pl.when(k == pl.num_programs(1) - 1)
    def _():
        o_ref[...] = (acc_ref[...] * s_ref[...]).astype(o_ref.dtype)


def matmul_xw(x, w, row_scale=None):
    """out = (x @ w) [* row_scale], stored bf16 (feeds the MXU downstream)."""
    n_pad, f_pad = x.shape
    h_pad = w.shape[1]
    tm = _pick_tile(n_pad)
    tk = _pick_k_tile(f_pad)
    grid = (n_pad // tm, f_pad // tk)
    x_spec = pl.BlockSpec((tm, tk), lambda i, k: (i, k))
    w_spec = pl.BlockSpec((tk, h_pad), lambda i, k: (k, 0))
    out_spec = pl.BlockSpec((tm, h_pad), lambda i, k: (i, 0))
    out_shape = jax.ShapeDtypeStruct((n_pad, h_pad), jnp.bfloat16)
    scratch = [pltpu.VMEM((tm, h_pad), jnp.float32)]
    cp = _compiler_params(("parallel", "arbitrary"))
    if row_scale is None:
        return pl.pallas_call(
            _xw_kernel, grid=grid,
            in_specs=[x_spec, w_spec], out_specs=out_spec,
            out_shape=out_shape, scratch_shapes=scratch, compiler_params=cp,
        )(x, w)
    s_spec = pl.BlockSpec((tm, 1), lambda i, k: (i, 0))
    return pl.pallas_call(
        _xw_scaled_kernel, grid=grid,
        in_specs=[x_spec, w_spec, s_spec], out_specs=out_spec,
        out_shape=out_shape, scratch_shapes=scratch, compiler_params=cp,
    )(x, w, row_scale)


# ---------------------------------------------------------------------------
# adjacency @ XW kernels (HBM-bound on the N^2 adjacency stream)
# ---------------------------------------------------------------------------
def _gcn_plain_kernel(adj_ref, xw_ref, o_ref, acc_ref, *, relu, resident, tk):
    """out = act(A @ XW), A already normalized (ep_net path)."""
    k = pl.program_id(1)

    @pl.when(k == 0)
    def _():
        acc_ref[...] = jnp.zeros_like(acc_ref)

    if resident:
        xw_blk = xw_ref[pl.ds(pl.multiple_of(k * tk, tk), tk), :]
    else:
        xw_blk = xw_ref[...]
    acc_ref[...] += jnp.dot(adj_ref[...].astype(jnp.bfloat16),
                            xw_blk.astype(jnp.bfloat16),
                            preferred_element_type=jnp.float32)

    @pl.when(k == pl.num_programs(1) - 1)
    def _():
        h = acc_ref[...]
        if relu:
            h = jnp.maximum(h, 0.0)
        o_ref[...] = h.astype(o_ref.dtype)


def gcn_adj_matmul(adj, xw, *, relu, out_dtype=jnp.float32):
    n_pad = adj.shape[0]
    h_pad = xw.shape[1]
    t = _pick_tile(n_pad)
    resident = n_pad * h_pad * xw.dtype.itemsize <= _RESIDENT_XW_BYTES
    if resident:   # DMA XW once, keep it in VMEM across the whole grid
        xw_spec = pl.BlockSpec((n_pad, h_pad), lambda i, k: (0, 0))
    else:
        xw_spec = pl.BlockSpec((t, h_pad), lambda i, k: (k, 0))
    return pl.pallas_call(
        functools.partial(_gcn_plain_kernel, relu=relu, resident=resident, tk=t),
        grid=(n_pad // t, n_pad // t),
        in_specs=[pl.BlockSpec((t, t), lambda i, k: (i, k)), xw_spec],
        out_specs=pl.BlockSpec((t, h_pad), lambda i, k: (i, 0)),
        out_shape=jax.ShapeDtypeStruct((n_pad, h_pad), out_dtype),
        scratch_shapes=[pltpu.VMEM((t, h_pad), jnp.float32)],
        compiler_params=_compiler_params(("parallel", "arbitrary")),
    )(adj, xw)


def _gcn_norm_kernel(adj_ref, xw_ref, dinv_i_ref, b_ref, o_ref, acc_ref, *,
                     relu, resident, tk):
    """out = act( D^-1/2 (A + I) D^-1/2 @ XW + b ), normalization fused.

    XW arrives ALREADY pre-scaled by dinv on its rows (matmul_xw epilogue):
        D^-1/2 A D^-1/2 XW = dinv_i * (A @ XWs)
        D^-1        I  XW  = dinv_i *  XWs        (diagonal tiles only)
    so the inner (i,k) loop is pure MXU + accumulate; all scaling is O(N*H).
    """
    i = pl.program_id(0)
    k = pl.program_id(1)

    @pl.when(k == 0)
    def _():
        acc_ref[...] = jnp.zeros_like(acc_ref)

    if resident:
        xw_blk = xw_ref[pl.ds(pl.multiple_of(k * tk, tk), tk), :]
    else:
        xw_blk = xw_ref[...]
    acc_ref[...] += jnp.dot(adj_ref[...].astype(jnp.bfloat16),
                            xw_blk.astype(jnp.bfloat16),
                            preferred_element_type=jnp.float32)

    @pl.when(k == i)                                   # self-loop (I) term
    def _():
        acc_ref[...] += xw_blk.astype(jnp.float32)

    @pl.when(k == pl.num_programs(1) - 1)
    def _():
        h = acc_ref[...] * dinv_i_ref[...] + b_ref[...]
        if relu:
            h = jnp.maximum(h, 0.0)
        o_ref[...] = h.astype(o_ref.dtype)


def gcn_adj_matmul_normed(adj, xw_scaled, dinv, bias, *, relu, out_dtype=jnp.float32):
    n_pad = adj.shape[0]
    h_pad = xw_scaled.shape[1]
    t = _pick_tile(n_pad)
    resident = n_pad * h_pad * xw_scaled.dtype.itemsize <= _RESIDENT_XW_BYTES
    if resident:
        xw_spec = pl.BlockSpec((n_pad, h_pad), lambda i, k: (0, 0))
    else:
        xw_spec = pl.BlockSpec((t, h_pad), lambda i, k: (k, 0))
    return pl.pallas_call(
        functools.partial(_gcn_norm_kernel, relu=relu, resident=resident, tk=t),
        grid=(n_pad // t, n_pad // t),
        in_specs=[pl.BlockSpec((t, t), lambda i, k: (i, k)),
                  xw_spec,
                  pl.BlockSpec((t, 1), lambda i, k: (i, 0)),      # dinv for output rows
                  pl.BlockSpec((1, h_pad), lambda i, k: (0, 0))],
        out_specs=pl.BlockSpec((t, h_pad), lambda i, k: (i, 0)),
        out_shape=jax.ShapeDtypeStruct((n_pad, h_pad), out_dtype),
        scratch_shapes=[pltpu.VMEM((t, h_pad), jnp.float32)],
        compiler_params=_compiler_params(("parallel", "arbitrary")),
    )(adj, xw_scaled, dinv, bias)


# ---------------------------------------------------------------------------
# adj_logits = Z @ Z^T
# TODO(synk): adj_logits is symmetric; a triangular grid could halve MXU work,
#             but the full matrix is a returned output so the dense form stays.
# ---------------------------------------------------------------------------
def _inner_kernel(zi_ref, zj_ref, o_ref):
    # contract embedding dim of both operands: no explicit transpose through XLU
    o_ref[...] = jax.lax.dot_general(
        zi_ref[...].astype(jnp.bfloat16), zj_ref[...].astype(jnp.bfloat16),
        (((1,), (1,)), ((), ())), preferred_element_type=jnp.float32)


def inner_product(z):
    n_pad, e_pad = z.shape
    t = _pick_tile(n_pad)
    return pl.pallas_call(
        _inner_kernel,
        grid=(n_pad // t, n_pad // t),
        in_specs=[pl.BlockSpec((t, e_pad), lambda i, j: (i, 0)),
                  pl.BlockSpec((t, e_pad), lambda i, j: (j, 0))],
        out_specs=pl.BlockSpec((t, t), lambda i, j: (i, j)),
        out_shape=jax.ShapeDtypeStruct((n_pad, n_pad), jnp.float32),
        compiler_params=_compiler_params(("parallel", "parallel")),
    )(z, z)


# ---------------------------------------------------------------------------
# Edge sampling (data-dependent selection; plain-JAX, full-matrix mask form)
# TODO(synk): dynamic-count top-k / threshold selection has no clean Pallas
#             equivalent; kept in XLA (matrix masks, no gathers/scatters).
# ---------------------------------------------------------------------------
def _triu_mask(n):
    row = jax.lax.broadcasted_iota(jnp.int32, (n, n), 0)
    col = jax.lax.broadcasted_iota(jnp.int32, (n, n), 1)
    return col > row


def _norm_scores(adj_logits, triu):
    smin = jnp.min(jnp.where(triu, adj_logits, jnp.inf))
    smax = jnp.max(jnp.where(triu, adj_logits, -jnp.inf))
    return (adj_logits - smin) / (smax - smin + 1e-8)


def sample_adj_edge_remove(adj_logits, adj_orig, change_frac):
    n = adj_orig.shape[0]
    triu = _triu_mask(n)
    norm = _norm_scores(adj_logits, triu)
    exist = (adj_orig > 0) & triu
    num_exist = jnp.sum(exist)
    num_delete = jnp.floor(num_exist.astype(jnp.float32) * change_frac).astype(jnp.int32)
    # num_delete-th smallest normalized score among existing edges (single sort)
    masked = jnp.where(exist, norm, jnp.inf).reshape(-1)
    sorted_scores = jnp.sort(masked)
    thr = sorted_scores[jnp.maximum(num_delete - 1, 0)]
    thr = jnp.where(num_delete < 1, -jnp.inf, thr)
    delete_upper = (norm < thr) & exist
    delete_full = delete_upper | delete_upper.T
    return jnp.where(delete_full, 0.0, adj_orig)


def sample_adj_edge_add(adj_logits, adj_orig, change_frac, adj_new):
    n = adj_orig.shape[0]
    triu = _triu_mask(n)
    norm = _norm_scores(adj_logits, triu)
    n_unique = jnp.sum((adj_orig != 0) & triu)
    n_add = jnp.floor(n_unique.astype(jnp.float32) * change_frac).astype(jnp.int32)
    cand = (adj_orig == 0) & triu
    num_cand = jnp.sum(cand)
    k = jnp.minimum(n_add, num_cand)
    # k-th largest candidate score as a threshold (one sort; replaces the
    # previous double argsort rank computation).
    # TODO(synk): exact score ties may admit a few extra edges vs torch.topk.
    cand_scores = jnp.where(cand, norm, -jnp.inf).reshape(-1)
    sorted_desc = jnp.sort(cand_scores)[::-1]
    thr = sorted_desc[jnp.maximum(k - 1, 0)]
    add_upper = (norm >= thr) & cand
    add_full = add_upper | add_upper.T
    adj_added = jnp.where(add_full, 1.0, adj_new)
    return jnp.where(n_add < 1, adj_new, adj_added)


# ---------------------------------------------------------------------------
# nc_net: 2-layer GCN with D^-1/2 (A+I) D^-1/2 normalization fused in-kernel
# ---------------------------------------------------------------------------
def nc_net_forward(params, x_pad, adj_new, n, n_pad, f_pad, num_targets):
    nc_hid_pad = _round_up(params["nc_w1"].shape[1], _LANE)
    cls_pad = _round_up(num_targets, _LANE)

    # degree^-1/2 in plain JAX; XLA fuses the rowsum with the pad/bf16 cast of
    # adj_new below (no extra Pallas pass over the adjacency).
    dinv = jax.lax.rsqrt(jnp.sum(adj_new, axis=1) + 1.0)       # +1 = self loop
    dinv_pad = jnp.pad(dinv, (0, n_pad - n)).reshape(n_pad, 1)
    adj_nc = _pad2(adj_new, n_pad, n_pad).astype(jnp.bfloat16)

    w1 = _pad2(params["nc_w1"], f_pad, nc_hid_pad)
    b1 = _pad2(params["nc_b1"].reshape(1, -1), 1, nc_hid_pad)
    w2 = _pad2(params["nc_w2"], nc_hid_pad, cls_pad)
    b2 = _pad2(params["nc_b2"].reshape(1, -1), 1, cls_pad)

    xw1s = matmul_xw(x_pad, w1, row_scale=dinv_pad)            # dinv-prescaled, bf16
    h = gcn_adj_matmul_normed(adj_nc, xw1s, dinv_pad, b1,
                              relu=True, out_dtype=jnp.bfloat16)
    xw2s = matmul_xw(h, w2, row_scale=dinv_pad)
    out = gcn_adj_matmul_normed(adj_nc, xw2s, dinv_pad, b2,
                                relu=False, out_dtype=jnp.float32)
    return out[:n, :num_targets]


# ---------------------------------------------------------------------------
# JNSGSL forward (two GSL branches; ep_net adjacency passes fused)
# ---------------------------------------------------------------------------
def jnsgsl_forward(params1, params2, feats, s_feats, normalized_adj, adj_orig,
                   remove_ratio, add_ratio):
    n, f1 = feats.shape
    f2 = s_feats.shape[1]
    n_pad = _round_up(n, _LANE)
    f1_pad = _round_up(f1, _LANE)
    f2_pad = _round_up(f2, _LANE)
    num_targets = params1["nc_w2"].shape[1]

    # features padded + cast to bf16 once; reused by ep_net and nc_net
    x1 = _pad2(feats.astype(jnp.float32), n_pad, f1_pad).astype(jnp.bfloat16)
    x2 = _pad2(s_feats.astype(jnp.float32), n_pad, f2_pad).astype(jnp.bfloat16)
    adj_ep = _pad2(normalized_adj.astype(jnp.float32), n_pad, n_pad).astype(jnp.bfloat16)

    # --- ep_net (VGAE) for BOTH branches through ONE adjacency pass per layer --
    hid1 = _round_up(params1["ep_w1"].shape[1], _LANE)
    hid2 = _round_up(params2["ep_w1"].shape[1], _LANE)
    emb1 = _round_up(params1["ep_w2"].shape[1], _LANE)
    emb2 = _round_up(params2["ep_w2"].shape[1], _LANE)

    xw_cat = jnp.concatenate(
        [matmul_xw(x1, _pad2(params1["ep_w1"], f1_pad, hid1)),
         matmul_xw(x2, _pad2(params2["ep_w1"], f2_pad, hid2))], axis=1)
    h_cat = gcn_adj_matmul(adj_ep, xw_cat, relu=True, out_dtype=jnp.bfloat16)
    h1, h2 = h_cat[:, :hid1], h_cat[:, hid1:]

    zw_cat = jnp.concatenate(
        [matmul_xw(h1, _pad2(params1["ep_w2"], hid1, emb1)),
         matmul_xw(h2, _pad2(params2["ep_w2"], hid2, emb2))], axis=1)
    # relu == the VGAE wrapper's NonLinear('relu') applied to the encoder mean
    z_cat = gcn_adj_matmul(adj_ep, zw_cat, relu=True, out_dtype=jnp.bfloat16)
    z1, z2 = z_cat[:, :emb1], z_cat[:, emb1:]

    adj_logits1 = inner_product(z1)[:n, :n]
    adj_logits2 = inner_product(z2)[:n, :n]

    # --- adjacency rewiring (branch-specific, data-dependent -> plain JAX) -----
    adj_orig32 = adj_orig.astype(jnp.float32)
    adj_new1 = sample_adj_edge_remove(adj_logits1, adj_orig32, remove_ratio)
    adj_new1 = sample_adj_edge_add(adj_logits1, adj_orig32, add_ratio, adj_new1)
    adj_new2 = sample_adj_edge_remove(adj_logits2, adj_orig32, remove_ratio)
    adj_new2 = sample_adj_edge_add(adj_logits2, adj_orig32, add_ratio, adj_new2)

    # --- nc_net per branch (rewired adjacency differs -> cannot batch) ---------
    out1 = nc_net_forward(params1, x1, adj_new1, n, n_pad, f1_pad, num_targets)
    out2 = nc_net_forward(params2, x2, adj_new2, n, n_pad, f2_pad, num_targets)

    return out1, adj_logits1, adj_new1, out2, adj_logits2, adj_new2


# ---------------------------------------------------------------------------
# Deterministic parameter init (glorot uniform, zero bias)
# ---------------------------------------------------------------------------
def glorot(key, fan_in, fan_out):
    limit = (6.0 / (fan_in + fan_out)) ** 0.5
    return jax.random.uniform(key, (fan_in, fan_out), jnp.float32, -limit, limit)


def init_gsl_params(key, in_dim, num_targets, n_embed, n_hidden):
    k1, k2, k3, k4 = jax.random.split(key, 4)
    return dict(
        ep_w1=glorot(k1, in_dim, n_hidden),
        ep_w2=glorot(k2, n_hidden, n_embed),
        nc_w1=glorot(k3, in_dim, n_hidden),
        nc_b1=jnp.zeros((n_hidden,), jnp.float32),
        nc_w2=glorot(k4, n_hidden, num_targets),
        nc_b2=jnp.zeros((num_targets,), jnp.float32),
    )


def normalize_dense(adj):
    """Input prep only: normalized_adj = D^-1/2 (A+I) D^-1/2 (module receives it)."""
    a = adj + jnp.eye(adj.shape[0], dtype=adj.dtype)
    d = jnp.sum(a, axis=1)
    dinv = jax.lax.rsqrt(jnp.maximum(d, 1e-12))
    return a * dinv[:, None] * dinv[None, :]


# ---------------------------------------------------------------------------
# Demo
# ---------------------------------------------------------------------------
if __name__ == "__main__":
    N, in_dim, s_in_dim, num_targets = 16, 32, 24, 4
    n_embed, n_hidden = 16, 32
    remove_ratio, add_ratio = 0.1, 0.1

    key = jax.random.PRNGKey(0)
    kf, ks, ka, kp1, kp2 = jax.random.split(key, 5)

    feats = jax.random.normal(kf, (N, in_dim), jnp.float32)
    s_feats = jax.random.normal(ks, (N, s_in_dim), jnp.float32)

    upper = (jax.random.uniform(ka, (N, N)) < 0.3).astype(jnp.float32)
    upper = jnp.triu(upper, k=1)
    adj_orig = upper + upper.T                    # symmetric, zero diagonal
    normalized_adj = normalize_dense(adj_orig)    # module input "normalized_adj"

    params1 = init_gsl_params(kp1, in_dim, num_targets, n_embed, n_hidden)
    params2 = init_gsl_params(kp2, s_in_dim, num_targets, n_embed, n_hidden)

    fwd = jax.jit(jnsgsl_forward)
    outs = fwd(params1, params2, feats, s_feats, normalized_adj, adj_orig,
               remove_ratio, add_ratio)
    outs = jax.block_until_ready(outs)

    out1, adj_logits, adj_new, out2, adj_logits2, adj_new2 = outs
    assert out1.shape == (N, num_targets) and out2.shape == (N, num_targets)
    assert adj_logits.shape == (N, N) and adj_logits2.shape == (N, N)
    assert adj_new.shape == (N, N) and adj_new2.shape == (N, N)
    assert all(bool(jnp.all(jnp.isfinite(o))) for o in
               (out1, out2, adj_logits, adj_logits2, adj_new, adj_new2))

    print("KERNEL_OK")
</pallas_src>

<mosaic_0001>
module attributes {stable_mosaic.version = 11 : i64} {
  func.func @_xw_kernel(%arg0: i32, %arg1: i32, %arg2: memref<128x128xbf16, #tpu.memory_space<vmem>>, %arg3: memref<128x128xf32, #tpu.memory_space<vmem>>, %arg4: memref<128x128xbf16, #tpu.memory_space<vmem>>, %arg5: memref<128x128xf32, #tpu.memory_space<vmem>>) attributes {dimension_semantics = [#tpu.dimension_semantics<parallel>, #tpu.dimension_semantics<arbitrary>], iteration_bounds = array<i64: 1, 1>, scalar_prefetch = 0 : i64, scratch_operands = 1 : i64, tpu.core_type = #tpu.core_type<tc>, window_params = [{transform_indices = @transform_0, window_bounds = array<i64: 128, 128>}, {transform_indices = @transform_1, window_bounds = array<i64: 128, 128>}, {transform_indices = @transform_2, window_bounds = array<i64: 128, 128>}]} {
    %c0_i32 = arith.constant 0 : i32
    %0 = arith.cmpi eq, %arg1, %c0_i32 : i32
    %1 = arith.extui %0 : i1 to i32
    %c0_i32_0 = arith.constant 0 : i32
    %2 = arith.cmpi ne, %1, %c0_i32_0 : i32
    scf.if %2 {
      %cst_10 = arith.constant 0.000000e+00 : f32
      %13 = vector.broadcast %cst_10 : f32 to vector<128x128xf32>
      %c0_11 = arith.constant 0 : index
      %c0_12 = arith.constant 0 : index
      %14 = vector.load %arg5[%c0_11, %c0_12] : memref<128x128xf32, #tpu.memory_space<vmem>>, vector<128x128xf32>
      tpu.vector_store %arg5[%c0_11, %c0_12], %13 {strides = array<i32>} : memref<128x128xf32, #tpu.memory_space<vmem>>, vector<128x128xf32>,
    } else {
    }
    %c0 = arith.constant 0 : index
    %c0_1 = arith.constant 0 : index
    %3 = vector.load %arg5[%c0, %c0_1] : memref<128x128xf32, #tpu.memory_space<vmem>>, vector<128x128xf32>
    %c0_2 = arith.constant 0 : index
    %c0_3 = arith.constant 0 : index
    %4 = vector.load %arg2[%c0_2, %c0_3] : memref<128x128xbf16, #tpu.memory_space<vmem>>, vector<128x128xbf16>
    %c0_4 = arith.constant 0 : index
    %c0_5 = arith.constant 0 : index
    %5 = vector.load %arg3[%c0_4, %c0_5] : memref<128x128xf32, #tpu.memory_space<vmem>>, vector<128x128xf32>
    %6 = arith.truncf %5 : vector<128x128xf32> to vector<128x128xbf16>
    %cst = arith.constant dense<0.000000e+00> : vector<128x128xf32>
    %7 = tpu.matmul %4, %6, %cst {dimension_numbers = #tpu.dot_dimension_numbers<[1], [0], [0], [1], [0, 0, 1, 1], [], []>} : vector<128x128xbf16>, vector<128x128xbf16>, vector<128x128xf32> -> vector<128x128xf32>
    %8 = arith.addf %3, %7 : vector<128x128xf32>
    %c0_6 = arith.constant 0 : index
    %c0_7 = arith.constant 0 : index
    %9 = vector.load %arg5[%c0_6, %c0_7] : memref<128x128xf32, #tpu.memory_space<vmem>>, vector<128x128xf32>
    tpu.vector_store %arg5[%c0_6, %c0_7], %8 {strides = array<i32>} : memref<128x128xf32, #tpu.memory_space<vmem>>, vector<128x128xf32>,
    %c0_i32_8 = arith.constant 0 : i32
    %10 = arith.cmpi eq, %arg1, %c0_i32_8 : i32
    %11 = arith.extui %10 : i1 to i32
    %c0_i32_9 = arith.constant 0 : i32
    %12 = arith.cmpi ne, %11, %c0_i32_9 : i32
    scf.if %12 {
      %c0_10 = arith.constant 0 : index
      %c0_11 = arith.constant 0 : index
      %13 = vector.load %arg5[%c0_10, %c0_11] : memref<128x128xf32, #tpu.memory_space<vmem>>, vector<128x128xf32>
      %14 = arith.truncf %13 : vector<128x128xf32> to vector<128x128xbf16>
      %c0_12 = arith.constant 0 : index
      %c0_13 = arith.constant 0 : index
      %15 = vector.load %arg4[%c0_12, %c0_13] : memref<128x128xbf16, #tpu.memory_space<vmem>>, vector<128x128xbf16>
      tpu.vector_store %arg4[%c0_12, %c0_13], %14 {strides = array<i32>} : memref<128x128xbf16, #tpu.memory_space<vmem>>, vector<128x128xbf16>,
    } else {
    }
    return
  }
  func.func @transform_0(%arg0: i32, %arg1: i32) -> (i32, i32) {
    %c0_i32 = arith.constant 0 : i32
    return %arg0, %arg1 : i32, i32
  }
  func.func @transform_1(%arg0: i32, %arg1: i32) -> (i32, i32) {
    %c0_i32 = arith.constant 0 : i32
    %c0_i32_0 = arith.constant 0 : i32
    return %arg1, %c0_i32 : i32, i32
  }
  func.func @transform_2(%arg0: i32, %arg1: i32) -> (i32, i32) {
    %c0_i32 = arith.constant 0 : i32
    %c0_i32_0 = arith.constant 0 : i32
    return %arg0, %c0_i32 : i32, i32
  }
}

module attributes {stable_mosaic.version = 11 : i64} {
  func.func @_gcn_plain_kernel(%arg0: i32, %arg1: i32, %arg2: memref<128x128xbf16, #tpu.memory_space<vmem>>, %arg3: memref<128x256xbf16, #tpu.memory_space<vmem>>, %arg4: memref<128x256xbf16, #tpu.memory_space<vmem>>, %arg5: memref<128x256xf32, #tpu.memory_space<vmem>>) attributes {dimension_semantics = [#tpu.dimension_semantics<parallel>, #tpu.dimension_semantics<arbitrary>], iteration_bounds = array<i64: 1, 1>, scalar_prefetch = 0 : i64, scratch_operands = 1 : i64, tpu.core_type = #tpu.core_type<tc>, window_params = [{transform_indices = @transform_0, window_bounds = array<i64: 128, 128>}, {pipeline_mode = #tpu.pipeline_mode<synchronous>, transform_indices = @transform_1, window_bounds = array<i64: 128, 256>}, {transform_indices = @transform_2, window_bounds = array<i64: 128, 256>}]} {
    %c0_i32 = arith.constant 0 : i32
    %0 = arith.cmpi eq, %arg1, %c0_i32 : i32
    %1 = arith.extui %0 : i1 to i32
    %c0_i32_0 = arith.constant 0 : i32
    %2 = arith.cmpi ne, %1, %c0_i32_0 : i32
    scf.if %2 {
      %cst_9 = arith.constant 0.000000e+00 : f32
      %15 = vector.broadcast %cst_9 : f32 to vector<128x256xf32>
      %c0_10 = arith.constant 0 : index
      %c0_11 = arith.constant 0 : index
      %16 = vector.load %arg5[%c0_10, %c0_11] : memref<128x256xf32, #tpu.memory_space<vmem>>, vector<128x256xf32>
      tpu.vector_store %arg5[%c0_10, %c0_11], %15 {strides = array<i32>} : memref<128x256xf32, #tpu.memory_space<vmem>>, vector<128x256xf32>,
    } else {
    }
    %c128_i32 = arith.constant 128 : i32
    %3 = arith.muli %arg1, %c128_i32 : i32
    %4 = tpu.assume_multiple %3, 128 : i32
    %5 = arith.index_cast %4 : i32 to index
    %c0 = arith.constant 0 : index
    %6 = vector.load %arg3[%5, %c0] : memref<128x256xbf16, #tpu.memory_space<vmem>>, vector<128x256xbf16>
    %c0_1 = arith.constant 0 : index
    %c0_2 = arith.constant 0 : index
    %7 = vector.load %arg5[%c0_1, %c0_2] : memref<128x256xf32, #tpu.memory_space<vmem>>, vector<128x256xf32>
    %c0_3 = arith.constant 0 : index
    %c0_4 = arith.constant 0 : index
    %8 = vector.load %arg2[%c0_3, %c0_4] : memref<128x128xbf16, #tpu.memory_space<vmem>>, vector<128x128xbf16>
    %cst = arith.constant dense<0.000000e+00> : vector<128x256xf32>
    %9 = tpu.matmul %8, %6, %cst {dimension_numbers = #tpu.dot_dimension_numbers<[1], [0], [0], [1], [0, 0, 1, 1], [], []>} : vector<128x128xbf16>, vector<128x256xbf16>, vector<128x256xf32> -> vector<128x256xf32>
    %10 = arith.addf %7, %9 : vector<128x256xf32>
    %c0_5 = arith.constant 0 : index
    %c0_6 = arith.constant 0 : index
    %11 = vector.load %arg5[%c0_5, %c0_6] : memref<128x256xf32, #tpu.memory_space<vmem>>, vector<128x256xf32>
    tpu.vector_store %arg5[%c0_5, %c0_6], %10 {strides = array<i32>} : memref<128x256xf32, #tpu.memory_space<vmem>>, vector<128x256xf32>,
    %c0_i32_7 = arith.constant 0 : i32
    %12 = arith.cmpi eq, %arg1, %c0_i32_7 : i32
    %13 = arith.extui %12 : i1 to i32
    %c0_i32_8 = arith.constant 0 : i32
    %14 = arith.cmpi ne, %13, %c0_i32_8 : i32
    scf.if %14 {
      %c0_9 = arith.constant 0 : index
      %c0_10 = arith.constant 0 : index
      %15 = vector.load %arg5[%c0_9, %c0_10] : memref<128x256xf32, #tpu.memory_space<vmem>>, vector<128x256xf32>
      %cst_11 = arith.constant 0.000000e+00 : f32
      %16 = vector.broadcast %cst_11 : f32 to vector<128x256xf32>
      %17 = arith.maximumf %15, %16 : vector<128x256xf32>
      %18 = arith.truncf %17 : vector<128x256xf32> to vector<128x256xbf16>
      %c0_12 = arith.constant 0 : index
      %c0_13 = arith.constant 0 : index
      %19 = vector.load %arg4[%c0_12, %c0_13] : memref<128x256xbf16, #tpu.memory_space<vmem>>, vector<128x256xbf16>
      tpu.vector_store %arg4[%c0_12, %c0_13], %18 {strides = array<i32>} : memref<128x256xbf16, #tpu.memory_space<vmem>>, vector<128x256xbf16>,
    } else {
    }
    return
  }
  func.func @transform_0(%arg0: i32, %arg1: i32) -> (i32, i32) {
    %c0_i32 = arith.constant 0 : i32
    return %arg0, %arg1 : i32, i32
  }
  func.func @transform_1(%arg0: i32, %arg1: i32) -> (i32, i32) {
    %c0_i32 = arith.constant 0 : i32
    %c0_i32_0 = arith.constant 0 : i32
    %c0_i32_1 = arith.constant 0 : i32
    return %c0_i32, %c0_i32_0 : i32, i32
  }
  func.func @transform_2(%arg0: i32, %arg1: i32) -> (i32, i32) {
    %c0_i32 = arith.constant 0 : i32
    %c0_i32_0 = arith.constant 0 : i32
    return %arg0, %c0_i32 : i32, i32
  }
}

module attributes {stable_mosaic.version = 11 : i64} {
  func.func @_inner_kernel(%arg0: i32, %arg1: i32, %arg2: memref<128x128xbf16, #tpu.memory_space<vmem>>, %arg3: memref<128x128xbf16, #tpu.memory_space<vmem>>, %arg4: memref<128x128xf32, #tpu.memory_space<vmem>>) attributes {dimension_semantics = [#tpu.dimension_semantics<parallel>, #tpu.dimension_semantics<parallel>], iteration_bounds = array<i64: 1, 1>, scalar_prefetch = 0 : i64, scratch_operands = 0 : i64, tpu.core_type = #tpu.core_type<tc>, window_params = [{transform_indices = @transform_0, window_bounds = array<i64: 128, 128>}, {transform_indices = @transform_1, window_bounds = array<i64: 128, 128>}, {transform_indices = @transform_2, window_bounds = array<i64: 128, 128>}]} {
    %c0 = arith.constant 0 : index
    %c0_0 = arith.constant 0 : index
    %0 = vector.load %arg2[%c0, %c0_0] : memref<128x128xbf16, #tpu.memory_space<vmem>>, vector<128x128xbf16>
    %c0_1 = arith.constant 0 : index
    %c0_2 = arith.constant 0 : index
    %1 = vector.load %arg3[%c0_1, %c0_2] : memref<128x128xbf16, #tpu.memory_space<vmem>>, vector<128x128xbf16>
    %cst = arith.constant dense<0.000000e+00> : vector<128x128xf32>
    %2 = tpu.matmul %0, %1, %cst {dimension_numbers = #tpu.dot_dimension_numbers<[1], [1], [0], [0], [0, 0, 1, 0], [], []>} : vector<128x128xbf16>, vector<128x128xbf16>, vector<128x128xf32> -> vector<128x128xf32>
    %c0_3 = arith.constant 0 : index
    %c0_4 = arith.constant 0 : index
    %3 = vector.load %arg4[%c0_3, %c0_4] : memref<128x128xf32, #tpu.memory_space<vmem>>, vector<128x128xf32>
    tpu.vector_store %arg4[%c0_3, %c0_4], %2 {strides = array<i32>} : memref<128x128xf32, #tpu.memory_space<vmem>>, vector<128x128xf32>,
    return
  }
  func.func @transform_0(%arg0: i32, %arg1: i32) -> (i32, i32) {
    %c0_i32 = arith.constant 0 : i32
    %c0_i32_0 = arith.constant 0 : i32
    return %arg0, %c0_i32 : i32, i32
  }
  func.func @transform_1(%arg0: i32, %arg1: i32) -> (i32, i32) {
    %c0_i32 = arith.constant 0 : i32
    %c0_i32_0 = arith.constant 0 : i32
    return %arg1, %c0_i32 : i32, i32
  }
  func.func @transform_2(%arg0: i32, %arg1: i32) -> (i32, i32) {
    %c0_i32 = arith.constant 0 : i32
    return %arg0, %arg1 : i32, i32
  }
}

module attributes {stable_mosaic.version = 11 : i64} {
  func.func @_xw_scaled_kernel(%arg0: i32, %arg1: i32, %arg2: memref<128x128xbf16, #tpu.memory_space<vmem>>, %arg3: memref<128x128xf32, #tpu.memory_space<vmem>>, %arg4: memref<128x1xf32, #tpu.memory_space<vmem>>, %arg5: memref<128x128xbf16, #tpu.memory_space<vmem>>, %arg6: memref<128x128xf32, #tpu.memory_space<vmem>>) attributes {dimension_semantics = [#tpu.dimension_semantics<parallel>, #tpu.dimension_semantics<arbitrary>], iteration_bounds = array<i64: 1, 1>, scalar_prefetch = 0 : i64, scratch_operands = 1 : i64, tpu.core_type = #tpu.core_type<tc>, window_params = [{transform_indices = @transform_0, window_bounds = array<i64: 128, 128>}, {transform_indices = @transform_1, window_bounds = array<i64: 128, 128>}, {transform_indices = @transform_2, window_bounds = array<i64: 128, 1>}, {transform_indices = @transform_3, window_bounds = array<i64: 128, 128>}]} {
    %c0_i32 = arith.constant 0 : i32
    %0 = arith.cmpi eq, %arg1, %c0_i32 : i32
    %1 = arith.extui %0 : i1 to i32
    %c0_i32_0 = arith.constant 0 : i32
    %2 = arith.cmpi ne, %1, %c0_i32_0 : i32
    scf.if %2 {
      %cst_10 = arith.constant 0.000000e+00 : f32
      %13 = vector.broadcast %cst_10 : f32 to vector<128x128xf32>
      %c0_11 = arith.constant 0 : index
      %c0_12 = arith.constant 0 : index
      %14 = vector.load %arg6[%c0_11, %c0_12] : memref<128x128xf32, #tpu.memory_space<vmem>>, vector<128x128xf32>
      tpu.vector_store %arg6[%c0_11, %c0_12], %13 {strides = array<i32>} : memref<128x128xf32, #tpu.memory_space<vmem>>, vector<128x128xf32>,
    } else {
    }
    %c0 = arith.constant 0 : index
    %c0_1 = arith.constant 0 : index
    %3 = vector.load %arg6[%c0, %c0_1] : memref<128x128xf32, #tpu.memory_space<vmem>>, vector<128x128xf32>
    %c0_2 = arith.constant 0 : index
    %c0_3 = arith.constant 0 : index
    %4 = vector.load %arg2[%c0_2, %c0_3] : memref<128x128xbf16, #tpu.memory_space<vmem>>, vector<128x128xbf16>
    %c0_4 = arith.constant 0 : index
    %c0_5 = arith.constant 0 : index
    %5 = vector.load %arg3[%c0_4, %c0_5] : memref<128x128xf32, #tpu.memory_space<vmem>>, vector<128x128xf32>
    %6 = arith.truncf %5 : vector<128x128xf32> to vector<128x128xbf16>
    %cst = arith.constant dense<0.000000e+00> : vector<128x128xf32>
    %7 = tpu.matmul %4, %6, %cst {dimension_numbers = #tpu.dot_dimension_numbers<[1], [0], [0], [1], [0, 0, 1, 1], [], []>} : vector<128x128xbf16>, vector<128x128xbf16>, vector<128x128xf32> -> vector<128x128xf32>
    %8 = arith.addf %3, %7 : vector<128x128xf32>
    %c0_6 = arith.constant 0 : index
    %c0_7 = arith.constant 0 : index
    %9 = vector.load %arg6[%c0_6, %c0_7] : memref<128x128xf32, #tpu.memory_space<vmem>>, vector<128x128xf32>
    tpu.vector_store %arg6[%c0_6, %c0_7], %8 {strides = array<i32>} : memref<128x128xf32, #tpu.memory_space<vmem>>, vector<128x128xf32>,
    %c0_i32_8 = arith.constant 0 : i32
    %10 = arith.cmpi eq, %arg1, %c0_i32_8 : i32
    %11 = arith.extui %10 : i1 to i32
    %c0_i32_9 = arith.constant 0 : i32
    %12 = arith.cmpi ne, %11, %c0_i32_9 : i32
    scf.if %12 {
      %c0_10 = arith.constant 0 : index
      %c0_11 = arith.constant 0 : index
      %13 = vector.load %arg6[%c0_10, %c0_11] : memref<128x128xf32, #tpu.memory_space<vmem>>, vector<128x128xf32>
      %c0_12 = arith.constant 0 : index
      %c0_13 = arith.constant 0 : index
      %14 = vector.load %arg4[%c0_12, %c0_13] : memref<128x1xf32, #tpu.memory_space<vmem>>, vector<128x1xf32>
      %15 = vector.broadcast %14 : vector<128x1xf32> to vector<128x128xf32>
      %16 = arith.mulf %13, %15 : vector<128x128xf32>
      %17 = arith.truncf %16 : vector<128x128xf32> to vector<128x128xbf16>
      %c0_14 = arith.constant 0 : index
      %c0_15 = arith.constant 0 : index
      %18 = vector.load %arg5[%c0_14, %c0_15] : memref<128x128xbf16, #tpu.memory_space<vmem>>, vector<128x128xbf16>
      tpu.vector_store %arg5[%c0_14, %c0_15], %17 {strides = array<i32>} : memref<128x128xbf16, #tpu.memory_space<vmem>>, vector<128x128xbf16>,
    } else {
    }
    return
  }
  func.func @transform_0(%arg0: i32, %arg1: i32) -> (i32, i32) {
    %c0_i32 = arith.constant 0 : i32
    return %arg0, %arg1 : i32, i32
  }
  func.func @transform_1(%arg0: i32, %arg1: i32) -> (i32, i32) {
    %c0_i32 = arith.constant 0 : i32
    %c0_i32_0 = arith.constant 0 : i32
    return %arg1, %c0_i32 : i32, i32
  }
  func.func @transform_2(%arg0: i32, %arg1: i32) -> (i32, i32) {
    %c0_i32 = arith.constant 0 : i32
    %c0_i32_0 = arith.constant 0 : i32
    return %arg0, %c0_i32 : i32, i32
  }
  func.func @transform_3(%arg0: i32, %arg1: i32) -> (i32, i32) {
    %c0_i32 = arith.constant 0 : i32
    %c0_i32_0 = arith.constant 0 : i32
    return %arg0, %c0_i32 : i32, i32
  }
}

module attributes {stable_mosaic.version = 11 : i64} {
  func.func @_gcn_norm_kernel(%arg0: i32, %arg1: i32, %arg2: memref<128x128xbf16, #tpu.memory_space<vmem>>, %arg3: memref<128x128xbf16, #tpu.memory_space<vmem>>, %arg4: memref<128x1xf32, #tpu.memory_space<vmem>>, %arg5: memref<1x128xf32, #tpu.memory_space<vmem>>, %arg6: memref<128x128xbf16, #tpu.memory_space<vmem>>, %arg7: memref<128x128xf32, #tpu.memory_space<vmem>>) attributes {dimension_semantics = [#tpu.dimension_semantics<parallel>, #tpu.dimension_semantics<arbitrary>], iteration_bounds = array<i64: 1, 1>, scalar_prefetch = 0 : i64, scratch_operands = 1 : i64, tpu.core_type = #tpu.core_type<tc>, window_params = [{transform_indices = @transform_0, window_bounds = array<i64: 128, 128>}, {pipeline_mode = #tpu.pipeline_mode<synchronous>, transform_indices = @transform_1, window_bounds = array<i64: 128, 128>}, {transform_indices = @transform_2, window_bounds = array<i64: 128, 1>}, {pipeline_mode = #tpu.pipeline_mode<synchronous>, transform_indices = @transform_3, window_bounds = array<i64: 1, 128>}, {transform_indices = @transform_4, window_bounds = array<i64: 128, 128>}]} {
    %c0_i32 = arith.constant 0 : i32
    %0 = arith.cmpi eq, %arg1, %c0_i32 : i32
    %1 = arith.extui %0 : i1 to i32
    %c0_i32_0 = arith.constant 0 : i32
    %2 = arith.cmpi ne, %1, %c0_i32_0 : i32
    scf.if %2 {
      %cst_10 = arith.constant 0.000000e+00 : f32
      %18 = vector.broadcast %cst_10 : f32 to vector<128x128xf32>
      %c0_11 = arith.constant 0 : index
      %c0_12 = arith.constant 0 : index
      %19 = vector.load %arg7[%c0_11, %c0_12] : memref<128x128xf32, #tpu.memory_space<vmem>>, vector<128x128xf32>
      tpu.vector_store %arg7[%c0_11, %c0_12], %18 {strides = array<i32>} : memref<128x128xf32, #tpu.memory_space<vmem>>, vector<128x128xf32>,
    } else {
    }
    %c128_i32 = arith.constant 128 : i32
    %3 = arith.muli %arg1, %c128_i32 : i32
    %4 = tpu.assume_multiple %3, 128 : i32
    %5 = arith.index_cast %4 : i32 to index
    %c0 = arith.constant 0 : index
    %6 = vector.load %arg3[%5, %c0] : memref<128x128xbf16, #tpu.memory_space<vmem>>, vector<128x128xbf16>
    %c0_1 = arith.constant 0 : index
    %c0_2 = arith.constant 0 : index
    %7 = vector.load %arg7[%c0_1, %c0_2] : memref<128x128xf32, #tpu.memory_space<vmem>>, vector<128x128xf32>
    %c0_3 = arith.constant 0 : index
    %c0_4 = arith.constant 0 : index
    %8 = vector.load %arg2[%c0_3, %c0_4] : memref<128x128xbf16, #tpu.memory_space<vmem>>, vector<128x128xbf16>
    %cst = arith.constant dense<0.000000e+00> : vector<128x128xf32>
    %9 = tpu.matmul %8, %6, %cst {dimension_numbers = #tpu.dot_dimension_numbers<[1], [0], [0], [1], [0, 0, 1, 1], [], []>} : vector<128x128xbf16>, vector<128x128xbf16>, vector<128x128xf32> -> vector<128x128xf32>
    %10 = arith.addf %7, %9 : vector<128x128xf32>
    %c0_5 = arith.constant 0 : index
    %c0_6 = arith.constant 0 : index
    %11 = vector.load %arg7[%c0_5, %c0_6] : memref<128x128xf32, #tpu.memory_space<vmem>>, vector<128x128xf32>
    tpu.vector_store %arg7[%c0_5, %c0_6], %10 {strides = array<i32>} : memref<128x128xf32, #tpu.memory_space<vmem>>, vector<128x128xf32>,
    %12 = arith.cmpi eq, %arg1, %arg0 : i32
    %13 = arith.extui %12 : i1 to i32
    %c0_i32_7 = arith.constant 0 : i32
    %14 = arith.cmpi ne, %13, %c0_i32_7 : i32
    scf.if %14 {
      %c0_10 = arith.constant 0 : index
      %c0_11 = arith.constant 0 : index
      %18 = vector.load %arg7[%c0_10, %c0_11] : memref<128x128xf32, #tpu.memory_space<vmem>>, vector<128x128xf32>
      %19 = arith.extf %6 : vector<128x128xbf16> to vector<128x128xf32>
      %20 = arith.addf %18, %19 : vector<128x128xf32>
      %c0_12 = arith.constant 0 : index
      %c0_13 = arith.constant 0 : index
      %21 = vector.load %arg7[%c0_12, %c0_13] : memref<128x128xf32, #tpu.memory_space<vmem>>, vector<128x128xf32>
      tpu.vector_store %arg7[%c0_12, %c0_13], %20 {strides = array<i32>} : memref<128x128xf32, #tpu.memory_space<vmem>>, vector<128x128xf32>,
    } else {
    }
    %c0_i32_8 = arith.constant 0 : i32
    %15 = arith.cmpi eq, %arg1, %c0_i32_8 : i32
    %16 = arith.extui %15 : i1 to i32
    %c0_i32_9 = arith.constant 0 : i32
    %17 = arith.cmpi ne, %16, %c0_i32_9 : i32
    scf.if %17 {
      %c0_10 = arith.constant 0 : index
      %c0_11 = arith.constant 0 : index
      %18 = vector.load %arg7[%c0_10, %c0_11] : memref<128x128xf32, #tpu.memory_space<vmem>>, vector<128x128xf32>
      %c0_12 = arith.constant 0 : index
      %c0_13 = arith.constant 0 : index
      %19 = vector.load %arg4[%c0_12, %c0_13] : memref<128x1xf32, #tpu.memory_space<vmem>>, vector<128x1xf32>
      %20 = vector.broadcast %19 : vector<128x1xf32> to vector<128x128xf32>
      %21 = arith.mulf %18, %20 : vector<128x128xf32>
      %c0_14 = arith.constant 0 : index
      %c0_15 = arith.constant 0 : index
      %22 = vector.load %arg5[%c0_14, %c0_15] : memref<1x128xf32, #tpu.memory_space<vmem>>, vector<1x128xf32>
      %23 = vector.broadcast %22 : vector<1x128xf32> to vector<128x128xf32>
      %24 = arith.addf %21, %23 : vector<128x128xf32>
      %cst_16 = arith.constant 0.000000e+00 : f32
      %25 = vector.broadcast %cst_16 : f32 to vector<128x128xf32>
      %26 = arith.maximumf %24, %25 : vector<128x128xf32>
      %27 = arith.truncf %26 : vector<128x128xf32> to vector<128x128xbf16>
      %c0_17 = arith.constant 0 : index
      %c0_18 = arith.constant 0 : index
      %28 = vector.load %arg6[%c0_17, %c0_18] : memref<128x128xbf16, #tpu.memory_space<vmem>>, vector<128x128xbf16>
      tpu.vector_store %arg6[%c0_17, %c0_18], %27 {strides = array<i32>} : memref<128x128xbf16, #tpu.memory_space<vmem>>, vector<128x128xbf16>,
    } else {
    }
    return
  }
  func.func @transform_0(%arg0: i32, %arg1: i32) -> (i32, i32) {
    %c0_i32 = arith.constant 0 : i32
    return %arg0, %arg1 : i32, i32
  }
  func.func @transform_1(%arg0: i32, %arg1: i32) -> (i32, i32) {
    %c0_i32 = arith.constant 0 : i32
    %c0_i32_0 = arith.constant 0 : i32
    %c0_i32_1 = arith.constant 0 : i32
    return %c0_i32, %c0_i32_0 : i32, i32
  }
  func.func @transform_2(%arg0: i32, %arg1: i32) -> (i32, i32) {
    %c0_i32 = arith.constant 0 : i32
    %c0_i32_0 = arith.constant 0 : i32
    return %arg0, %c0_i32 : i32, i32
  }
  func.func @transform_3(%arg0: i32, %arg1: i32) -> (i32, i32) {
    %c0_i32 = arith.constant 0 : i32
    %c0_i32_0 = arith.constant 0 : i32
    %c0_i32_1 = arith.constant 0 : i32
    return %c0_i32, %c0_i32_0 : i32, i32
  }
  func.func @transform_4(%arg0: i32, %arg1: i32) -> (i32, i32) {
    %c0_i32 = arith.constant 0 : i32
    %c0_i32_0 = arith.constant 0 : i32
    return %arg0, %c0_i32 : i32, i32
  }
}

module attributes {stable_mosaic.version = 11 : i64} {
  func.func @_gcn_norm_kernel(%arg0: i32, %arg1: i32, %arg2: memref<128x128xbf16, #tpu.memory_space<vmem>>, %arg3: memref<128x128xbf16, #tpu.memory_space<vmem>>, %arg4: memref<128x1xf32, #tpu.memory_space<vmem>>, %arg5: memref<1x128xf32, #tpu.memory_space<vmem>>, %arg6: memref<128x128xf32, #tpu.memory_space<vmem>>, %arg7: memref<128x128xf32, #tpu.memory_space<vmem>>) attributes {dimension_semantics = [#tpu.dimension_semantics<parallel>, #tpu.dimension_semantics<arbitrary>], iteration_bounds = array<i64: 1, 1>, scalar_prefetch = 0 : i64, scratch_operands = 1 : i64, tpu.core_type = #tpu.core_type<tc>, window_params = [{transform_indices = @transform_0, window_bounds = array<i64: 128, 128>}, {pipeline_mode = #tpu.pipeline_mode<synchronous>, transform_indices = @transform_1, window_bounds = array<i64: 128, 128>}, {transform_indices = @transform_2, window_bounds = array<i64: 128, 1>}, {pipeline_mode = #tpu.pipeline_mode<synchronous>, transform_indices = @transform_3, window_bounds = array<i64: 1, 128>}, {transform_indices = @transform_4, window_bounds = array<i64: 128, 128>}]} {
    %c0_i32 = arith.constant 0 : i32
    %0 = arith.cmpi eq, %arg1, %c0_i32 : i32
    %1 = arith.extui %0 : i1 to i32
    %c0_i32_0 = arith.constant 0 : i32
    %2 = arith.cmpi ne, %1, %c0_i32_0 : i32
    scf.if %2 {
      %cst_10 = arith.constant 0.000000e+00 : f32
      %18 = vector.broadcast %cst_10 : f32 to vector<128x128xf32>
      %c0_11 = arith.constant 0 : index
      %c0_12 = arith.constant 0 : index
      %19 = vector.load %arg7[%c0_11, %c0_12] : memref<128x128xf32, #tpu.memory_space<vmem>>, vector<128x128xf32>
      tpu.vector_store %arg7[%c0_11, %c0_12], %18 {strides = array<i32>} : memref<128x128xf32, #tpu.memory_space<vmem>>, vector<128x128xf32>,
    } else {
    }
    %c128_i32 = arith.constant 128 : i32
    %3 = arith.muli %arg1, %c128_i32 : i32
    %4 = tpu.assume_multiple %3, 128 : i32
    %5 = arith.index_cast %4 : i32 to index
    %c0 = arith.constant 0 : index
    %6 = vector.load %arg3[%5, %c0] : memref<128x128xbf16, #tpu.memory_space<vmem>>, vector<128x128xbf16>
    %c0_1 = arith.constant 0 : index
    %c0_2 = arith.constant 0 : index
    %7 = vector.load %arg7[%c0_1, %c0_2] : memref<128x128xf32, #tpu.memory_space<vmem>>, vector<128x128xf32>
    %c0_3 = arith.constant 0 : index
    %c0_4 = arith.constant 0 : index
    %8 = vector.load %arg2[%c0_3, %c0_4] : memref<128x128xbf16, #tpu.memory_space<vmem>>, vector<128x128xbf16>
    %cst = arith.constant dense<0.000000e+00> : vector<128x128xf32>
    %9 = tpu.matmul %8, %6, %cst {dimension_numbers = #tpu.dot_dimension_numbers<[1], [0], [0], [1], [0, 0, 1, 1], [], []>} : vector<128x128xbf16>, vector<128x128xbf16>, vector<128x128xf32> -> vector<128x128xf32>
    %10 = arith.addf %7, %9 : vector<128x128xf32>
    %c0_5 = arith.constant 0 : index
    %c0_6 = arith.constant 0 : index
    %11 = vector.load %arg7[%c0_5, %c0_6] : memref<128x128xf32, #tpu.memory_space<vmem>>, vector<128x128xf32>
    tpu.vector_store %arg7[%c0_5, %c0_6], %10 {strides = array<i32>} : memref<128x128xf32, #tpu.memory_space<vmem>>, vector<128x128xf32>,
    %12 = arith.cmpi eq, %arg1, %arg0 : i32
    %13 = arith.extui %12 : i1 to i32
    %c0_i32_7 = arith.constant 0 : i32
    %14 = arith.cmpi ne, %13, %c0_i32_7 : i32
    scf.if %14 {
      %c0_10 = arith.constant 0 : index
      %c0_11 = arith.constant 0 : index
      %18 = vector.load %arg7[%c0_10, %c0_11] : memref<128x128xf32, #tpu.memory_space<vmem>>, vector<128x128xf32>
      %19 = arith.extf %6 : vector<128x128xbf16> to vector<128x128xf32>
      %20 = arith.addf %18, %19 : vector<128x128xf32>
      %c0_12 = arith.constant 0 : index
      %c0_13 = arith.constant 0 : index
      %21 = vector.load %arg7[%c0_12, %c0_13] : memref<128x128xf32, #tpu.memory_space<vmem>>, vector<128x128xf32>
      tpu.vector_store %arg7[%c0_12, %c0_13], %20 {strides = array<i32>} : memref<128x128xf32, #tpu.memory_space<vmem>>, vector<128x128xf32>,
    } else {
    }
    %c0_i32_8 = arith.constant 0 : i32
    %15 = arith.cmpi eq, %arg1, %c0_i32_8 : i32
    %16 = arith.extui %15 : i1 to i32
    %c0_i32_9 = arith.constant 0 : i32
    %17 = arith.cmpi ne, %16, %c0_i32_9 : i32
    scf.if %17 {
      %c0_10 = arith.constant 0 : index
      %c0_11 = arith.constant 0 : index
      %18 = vector.load %arg7[%c0_10, %c0_11] : memref<128x128xf32, #tpu.memory_space<vmem>>, vector<128x128xf32>
      %c0_12 = arith.constant 0 : index
      %c0_13 = arith.constant 0 : index
      %19 = vector.load %arg4[%c0_12, %c0_13] : memref<128x1xf32, #tpu.memory_space<vmem>>, vector<128x1xf32>
      %20 = vector.broadcast %19 : vector<128x1xf32> to vector<128x128xf32>
      %21 = arith.mulf %18, %20 : vector<128x128xf32>
      %c0_14 = arith.constant 0 : index
      %c0_15 = arith.constant 0 : index
      %22 = vector.load %arg5[%c0_14, %c0_15] : memref<1x128xf32, #tpu.memory_space<vmem>>, vector<1x128xf32>
      %23 = vector.broadcast %22 : vector<1x128xf32> to vector<128x128xf32>
      %24 = arith.addf %21, %23 : vector<128x128xf32>
      %c0_16 = arith.constant 0 : index
      %c0_17 = arith.constant 0 : index
      %25 = vector.load %arg6[%c0_16, %c0_17] : memref<128x128xf32, #tpu.memory_space<vmem>>, vector<128x128xf32>
      tpu.vector_store %arg6[%c0_16, %c0_17], %24 {strides = array<i32>} : memref<128x128xf32, #tpu.memory_space<vmem>>, vector<128x128xf32>,
    } else {
    }
    return
  }
  func.func @transform_0(%arg0: i32, %arg1: i32) -> (i32, i32) {
    %c0_i32 = arith.constant 0 : i32
    return %arg0, %arg1 : i32, i32
  }
  func.func @transform_1(%arg0: i32, %arg1: i32) -> (i32, i32) {
    %c0_i32 = arith.constant 0 : i32
    %c0_i32_0 = arith.constant 0 : i32
    %c0_i32_1 = arith.constant 0 : i32
    return %c0_i32, %c0_i32_0 : i32, i32
  }
  func.func @transform_2(%arg0: i32, %arg1: i32) -> (i32, i32) {
    %c0_i32 = arith.constant 0 : i32
    %c0_i32_0 = arith.constant 0 : i32
    return %arg0, %c0_i32 : i32, i32
  }
  func.func @transform_3(%arg0: i32, %arg1: i32) -> (i32, i32) {
    %c0_i32 = arith.constant 0 : i32
    %c0_i32_0 = arith.constant 0 : i32
    %c0_i32_1 = arith.constant 0 : i32
    return %c0_i32, %c0_i32_0 : i32, i32
  }
  func.func @transform_4(%arg0: i32, %arg1: i32) -> (i32, i32) {
    %c0_i32 = arith.constant 0 : i32
    %c0_i32_0 = arith.constant 0 : i32
    return %arg0, %c0_i32 : i32, i32
  }
}

</mosaic_0001>

<bundles_post_ra>
// kernel: jnsgsl_forward.16
= control target key start
LH: loop header
LB: loop body
LE: loop exit
PB: predicated region body
PF: predicated region fallthrough
CT: control target
= control target key end

     0   :  { %s638_s1 = inlined_call_operand.vmem [shape: f32[128,128], index: 1, kind: input, shape index: {}]   ;;  %s639_s0 = inlined_call_operand.vmem [shape: bf16[128,128], index: 0, kind: input, shape index: {}]   ;;  %s640_s2 = inlined_call_operand.vmem [shape: bf16[128,128], index: 2, kind: output, shape index: {}]  }
   0x1   :  { %v78_v0 = vld [vmem:[%s638_s1 + $0x70] sm:$0xff]  ;;  %v79_v1 = vld [vmem:[%s638_s1 + $0x78] sm:$0xff]  ;;  %v76_v2 = vld [vmem:[%s638_s1 + $0x60] sm:$0xff] }
   0x2   :  { %v87_v3 = vpack.c.bf16 %v79_v1, %v78_v0  ;;  %v77_v4 = vld [vmem:[%s638_s1 + $0x68] sm:$0xff]  ;;  %v74_v6 = vld [vmem:[%s638_s1 + $0x50] sm:$0xff]  ;;  %v75_v7 = vld [vmem:[%s638_s1 + $0x58] sm:$0xff] }
   0x3   :  { %v86_v5 = vpack.c.bf16 %v77_v4, %v76_v2  ;;  %v72_v8 = vld [vmem:[%s638_s1 + $0x40] sm:$0xff]  ;;  %v85_v9 = vpack.c.bf16 %v75_v7, %v74_v6  ;;  %v73_v10 = vld [vmem:[%s638_s1 + $0x48] sm:$0xff]  ;;  %v70_v14 = vld [vmem:[%s638_s1 + $0x30] sm:$0xff] }
   0x4   :  { %471 = vmatprep.subr.bf16.mxu0 %v87_v3  ;;  %503 = vmatprep.subr.bf16.mxu1 %v87_v3  ;;  %v519_v11 = vld [vmem:[%s639_s0] sm:$0xff]   ;;  %v84_v13 = vpack.c.bf16 %v73_v10, %v72_v8  ;;  %v71_v15 = vld [vmem:[%s638_s1 + $0x38] sm:$0xff]  ;;  %v69_v18 = vld [vmem:[%s638_s1 + $0x28] sm:$0xff] }
   0x5   :  { %472 = vmatpush3.bf16.msra.mxu0 %v87_v3  ;;  %511 = vmatpush3.bf16.msra.mxu1 %v87_v3  ;;  %v520_v12 = vld [vmem:[%s639_s0 + $0x20] sm:$0xff]   ;;  %v83_v16 = vpack.c.bf16 %v71_v15, %v70_v14  ;;  %v66_v20 = vld [vmem:[%s638_s1 + $0x10] sm:$0xff]  ;;  %v67_v21 = vld [vmem:[%s638_s1 + $0x18] sm:$0xff] }
   0x6   :  { %473 = vmatprep.subr.bf16.mxu0 %v86_v5  ;;  %504 = vmatprep.subr.bf16.mxu1 %v86_v5  ;;  %v68_v17 = vld [vmem:[%s638_s1 + $0x20] sm:$0xff]  ;;  %v81_v22 = vpack.c.bf16 %v67_v21, %v66_v20  ;;  %v65_v24 = vld [vmem:[%s638_s1 + $0x8] sm:$0xff]  ;;  %v523_v28 = vld [vmem:[%s639_s0 + $0x10] sm:$0xff]  }
   0x7   :  { %487 = vmatprep.mubr.bf16.mxu0 %v519_v11  ;;  %495 = vmatprep.mubr.bf16.mxu1 %v520_v12  ;;  %v82_v19 = vpack.c.bf16 %v69_v18, %v68_v17  ;;  %v64_v23 = vld [vmem:[%s638_s1] sm:$0xff]  ;;  %v521_v26 = vld [vmem:[%s639_s0 + $0x8] sm:$0xff]   ;;  %v524_v29 = vld [vmem:[%s639_s0 + $0x30] sm:$0xff]  }
   0x8   :  { %v80_v25 = vpack.c.bf16 %v65_v24, %v64_v23  ;;  %v522_v27 = vld [vmem:[%s639_s0 + $0x28] sm:$0xff]   ;;  %v525_v30 = vld [vmem:[%s639_s0 + $0x18] sm:$0xff]  }
   0x9   :  { %474 = vmatpush3.bf16.msra.mxu0 %v86_v5  ;;  %512 = vmatpush3.bf16.msra.mxu1 %v86_v5  ;;  %v526_v31 = vld [vmem:[%s639_s0 + $0x38] sm:$0xff]  }
   0xa   :  { %475 = vmatprep.subr.bf16.mxu0 %v85_v9  ;;  %505 = vmatprep.subr.bf16.mxu1 %v85_v9 }
   0xd   :  { %476 = vmatpush3.bf16.msra.mxu0 %v85_v9  ;;  %513 = vmatpush3.bf16.msra.mxu1 %v85_v9 }
   0xe   :  { %477 = vmatprep.subr.bf16.mxu0 %v84_v13  ;;  %506 = vmatprep.subr.bf16.mxu1 %v84_v13 }
  0x11   :  { %478 = vmatpush3.bf16.msra.mxu0 %v84_v13  ;;  %514 = vmatpush3.bf16.msra.mxu1 %v84_v13 }
  0x12   :  { %479 = vmatprep.subr.bf16.mxu0 %v83_v16  ;;  %507 = vmatprep.subr.bf16.mxu1 %v83_v16 }
  0x15   :  { %480 = vmatpush3.bf16.msra.mxu0 %v83_v16  ;;  %515 = vmatpush3.bf16.msra.mxu1 %v83_v16 }
  0x16   :  { %481 = vmatprep.subr.bf16.mxu0 %v82_v19  ;;  %508 = vmatprep.subr.bf16.mxu1 %v82_v19 }
  0x19   :  { %482 = vmatpush3.bf16.msra.mxu0 %v82_v19  ;;  %516 = vmatpush3.bf16.msra.mxu1 %v82_v19 }
  0x1a   :  { %483 = vmatprep.subr.bf16.mxu0 %v81_v22  ;;  %509 = vmatprep.subr.bf16.mxu1 %v81_v22 }
  0x1d   :  { %484 = vmatpush3.bf16.msra.mxu0 %v81_v22  ;;  %517 = vmatpush3.bf16.msra.mxu1 %v81_v22 }
  0x1e   :  { %485 = vmatprep.subr.bf16.mxu0 %v80_v25  ;;  %510 = vmatprep.subr.bf16.mxu1 %v80_v25 }
  0x21   :  { %486 = vmatpush3.bf16.msra.mxu0 %v80_v25  ;;  %518 = vmatpush3.bf16.msra.mxu1 %v80_v25 }
  0x24   :  { %488 = vmatmul.mubr.bf16.vlgmr.msra.gmra.mxu0 %v521_v26  ;;  %496 = vmatmul.mubr.bf16.vlgmr.msra.gmra.mxu1 %v522_v27 }
  0x25   :  { %491 = vmatprep.mubr.bf16.mxu0 %v523_v28  ;;  %499 = vmatprep.mubr.bf16.mxu1 %v524_v29 }
  0x2c   :  { %492 = vmatmul.mubr.bf16.gmra.mxu0 %v525_v30  ;;  %500 = vmatmul.mubr.bf16.gmra.mxu1 %v526_v31 }
  0xe4   :  { %v489_v32 = vpop.f32.mrf.mxu0  ;;  %v497_v33 = vpop.f32.mrf.mxu1 }
  0xe6   :  { %v170_v34 = vpop.f32.mrf.mxu0  ;;  %v202_v35 = vpop.f32.mrf.mxu1 }
  0xe8   :  { %v490_v36 = vpop.f32.mrf.mxu0  ;;  %v498_v37 = vpop.f32.mrf.mxu1 }
  0xe9   :  { %v416_v38 = vpack.c.bf16 %v490_v36, %v489_v32  ;;  %v436_v39 = vpack.c.bf16 %v498_v37, %v497_v33 }
  0xea   :  { %v173_v40 = vpop.f32.mrf.mxu0  ;;  %v205_v41 = vpop.f32.mrf.mxu1 }
  0xeb   :  { %448 = vst [vmem:[%s640_s2 + $0x8] sm:$0xff] %v416_v38   ;;  %452 = vst [vmem:[%s640_s2 + $0x28] sm:$0xff] %v436_v39   ;;  %v411_v42 = vpack.c.bf16 %v173_v40, %v170_v34  ;;  %v431_v43 = vpack.c.bf16 %v205_v41, %v202_v35 }
  0xec   :  { %v493_v44 = vpop.f32.mrf.mxu0  ;;  %v501_v45 = vpop.f32.mrf.mxu1 }
  0xed   :  { %412 = vst [vmem:[%s640_s2] sm:$0xff] %v411_v42   ;;  %451 = vst [vmem:[%s640_s2 + $0x20] sm:$0xff] %v431_v43  }
  0xee   :  { %v186_v46 = vpop.f32.mrf.mxu0  ;;  %v218_v47 = vpop.f32.mrf.mxu1 }
  0xf0   :  { %v494_v48 = vpop.f32.mrf.mxu0  ;;  %v502_v49 = vpop.f32.mrf.mxu1 }
  0xf1   :  { %v426_v50 = vpack.c.bf16 %v494_v48, %v493_v44  ;;  %v446_v51 = vpack.c.bf16 %v502_v49, %v501_v45 }
  0xf2   :  { %v189_v52 = vpop.f32.mrf.mxu0  ;;  %v221_v53 = vpop.f32.mrf.mxu1 }
  0xf3   :  { %450 = vst [vmem:[%s640_s2 + $0x18] sm:$0xff] %v426_v50   ;;  %454 = vst [vmem:[%s640_s2 + $0x38] sm:$0xff] %v446_v51   ;;  %v421_v54 = vpack.c.bf16 %v189_v52, %v186_v46  ;;  %v441_v55 = vpack.c.bf16 %v221_v53, %v218_v47 }
  0xf5   :  { %449 = vst [vmem:[%s640_s2 + $0x10] sm:$0xff] %v421_v54   ;;  %453 = vst [vmem:[%s640_s2 + $0x30] sm:$0xff] %v441_v55  }

// kernel: jnsgsl_forward.18
= control target key start
LH: loop header
LB: loop body
LE: loop exit
PB: predicated region body
PF: predicated region fallthrough
CT: control target
= control target key end

     0   :  { %v713_v1 = vmov 0   ;;  %s857_s1 = inlined_call_operand.vmem [shape: bf16[128,256], index: 1, kind: input, shape index: {}]   ;;  %s858_s0 = inlined_call_operand.vmem [shape: bf16[128,128], index: 0, kind: input, shape index: {}]   ;;  %s859_s2 = inlined_call_operand.vmem [shape: bf16[128,256], index: 2, kind: output, shape index: {}]  }
   0x1   :  { %v681_v0 = vld [vmem:[%s857_s1 + $0x74] ss:$8 sps:$4 sm:$0xff]   ;;  %278 = vmatprep.mubr.bf16.mxu0 %v713_v1  ;;  %318 = vmatprep.mubr.bf16.mxu1 %v713_v1  ;;  %v683_v2 = vld [vmem:[%s857_s1 + $0x70] ss:$8 sps:$4 sm:$0xff]   ;;  %v684_v3 = vld [vmem:[%s857_s1 + $0x64] ss:$8 sps:$4 sm:$0xff]  }
   0x2   :  { %246 = vmatprep.subr.bf16.mxu0 %v681_v0  ;;  %664 = vmatprep.subr.bf16.mxu1 %v681_v0  ;;  %v686_v4 = vld [vmem:[%s857_s1 + $0x60] ss:$8 sps:$4 sm:$0xff]   ;;  %v687_v5 = vld [vmem:[%s857_s1 + $0x54] ss:$8 sps:$4 sm:$0xff]   ;;  %v689_v6 = vld [vmem:[%s857_s1 + $0x50] ss:$8 sps:$4 sm:$0xff]  }
   0x3   :  { %247 = vmatpush1.bf16.msra.mxu0 %v683_v2  ;;  %672 = vmatpush1.bf16.msra.mxu1 %v683_v2  ;;  %v690_v7 = vld [vmem:[%s857_s1 + $0x44] ss:$8 sps:$4 sm:$0xff]   ;;  %v692_v8 = vld [vmem:[%s857_s1 + $0x40] ss:$8 sps:$4 sm:$0xff]   ;;  %v693_v9 = vld [vmem:[%s857_s1 + $0x34] ss:$8 sps:$4 sm:$0xff]  }
   0x4   :  { %248 = vmatprep.subr.bf16.mxu0 %v684_v3  ;;  %665 = vmatprep.subr.bf16.mxu1 %v684_v3  ;;  %v695_v10 = vld [vmem:[%s857_s1 + $0x30] ss:$8 sps:$4 sm:$0xff]   ;;  %v696_v11 = vld [vmem:[%s857_s1 + $0x24] ss:$8 sps:$4 sm:$0xff]   ;;  %v698_v12 = vld [vmem:[%s857_s1 + $0x20] ss:$8 sps:$4 sm:$0xff]  }
   0x5   :  { %v699_v13 = vld [vmem:[%s857_s1 + $0x14] ss:$8 sps:$4 sm:$0xff]   ;;  %v701_v14 = vld [vmem:[%s857_s1 + $0x10] ss:$8 sps:$4 sm:$0xff]   ;;  %v702_v15 = vld [vmem:[%s857_s1 + $0x4] ss:$8 sps:$4 sm:$0xff]  }
   0x6   :  { %v704_v16 = vld [vmem:[%s857_s1] ss:$8 sps:$4 sm:$0xff]   ;;  %v709_v21 = vld [vmem:[%s858_s0 + $0x10] sm:$0xff]   ;;  %v711_v23 = vld [vmem:[%s858_s0 + $0x18] sm:$0xff]  }
   0x7   :  { %249 = vmatpush1.bf16.msra.mxu0 %v686_v4  ;;  %673 = vmatpush1.bf16.msra.mxu1 %v686_v4  ;;  %v705_v17 = vld [vmem:[%s858_s0] sm:$0xff]   ;;  %v707_v19 = vld [vmem:[%s858_s0 + $0x8] sm:$0xff]   ;;  %v710_v22 = vld [vmem:[%s858_s0 + $0x30] sm:$0xff]  }
   0x8   :  { %250 = vmatprep.subr.bf16.mxu0 %v687_v5  ;;  %666 = vmatprep.subr.bf16.mxu1 %v687_v5  ;;  %v706_v18 = vld [vmem:[%s858_s0 + $0x20] sm:$0xff]   ;;  %v708_v20 = vld [vmem:[%s858_s0 + $0x28] sm:$0xff]   ;;  %v712_v24 = vld [vmem:[%s858_s0 + $0x38] sm:$0xff]  }
   0xb   :  { %251 = vmatpush1.bf16.msra.mxu0 %v689_v6  ;;  %674 = vmatpush1.bf16.msra.mxu1 %v689_v6 }
   0xc   :  { %252 = vmatprep.subr.bf16.mxu0 %v690_v7  ;;  %667 = vmatprep.subr.bf16.mxu1 %v690_v7 }
   0xf   :  { %253 = vmatpush1.bf16.msra.mxu0 %v692_v8  ;;  %675 = vmatpush1.bf16.msra.mxu1 %v692_v8 }
  0x10   :  { %254 = vmatprep.subr.bf16.mxu0 %v693_v9  ;;  %668 = vmatprep.subr.bf16.mxu1 %v693_v9 }
  0x13   :  { %255 = vmatpush1.bf16.msra.mxu0 %v695_v10  ;;  %676 = vmatpush1.bf16.msra.mxu1 %v695_v10 }
  0x14   :  { %256 = vmatprep.subr.bf16.mxu0 %v696_v11  ;;  %669 = vmatprep.subr.bf16.mxu1 %v696_v11 }
  0x17   :  { %257 = vmatpush1.bf16.msra.mxu0 %v698_v12  ;;  %677 = vmatpush1.bf16.msra.mxu1 %v698_v12 }
  0x18   :  { %258 = vmatprep.subr.bf16.mxu0 %v699_v13  ;;  %670 = vmatprep.subr.bf16.mxu1 %v699_v13 }
  0x1b   :  { %259 = vmatpush1.bf16.msra.mxu0 %v701_v14  ;;  %678 = vmatpush1.bf16.msra.mxu1 %v701_v14 }
  0x1c   :  { %260 = vmatprep.subr.bf16.mxu0 %v702_v15  ;;  %671 = vmatprep.subr.bf16.mxu1 %v702_v15 }
  0x1f   :  { %261 = vmatpush1.bf16.msra.mxu0 %v704_v16  ;;  %679 = vmatpush1.bf16.msra.mxu1 %v704_v16 }
  0x22   :  { %279 = vmatmul.mubr.bf16.vlgmr.msra.gmra.mxu0 %v705_v17  ;;  %319 = vmatmul.mubr.bf16.vlgmr.msra.gmra.mxu1 %v706_v18 }
  0x23   :  { %288 = vmatprep.mubr.bf16.mxu0 %v713_v1  ;;  %328 = vmatprep.mubr.bf16.mxu1 %v713_v1 }
  0x2a   :  { %289 = vmatmul.mubr.bf16.gmra.mxu0 %v707_v19  ;;  %329 = vmatmul.mubr.bf16.gmra.mxu1 %v708_v20 }
  0x2b   :  { %298 = vmatprep.mubr.bf16.mxu0 %v713_v1  ;;  %338 = vmatprep.mubr.bf16.mxu1 %v713_v1 }
  0x32   :  { %299 = vmatmul.mubr.bf16.gmra.mxu0 %v709_v21  ;;  %339 = vmatmul.mubr.bf16.gmra.mxu1 %v710_v22 }
  0x33   :  { %308 = vmatprep.mubr.bf16.mxu0 %v713_v1  ;;  %348 = vmatprep.mubr.bf16.mxu1 %v713_v1 }
  0x3a   :  { %309 = vmatmul.mubr.bf16.gmra.mxu0 %v711_v23  ;;  %349 = vmatmul.mubr.bf16.gmra.mxu1 %v712_v24 }
  0xe2   :  { %v280_v25 = vpop.f32.mrf.mxu0  ;;  %v320_v26 = vpop.f32.mrf.mxu1 }
  0xe3   :  { %v458_v29 = vmax.f32 %v280_v25, 0.0  ;;  %v474_v30 = vmax.f32 %v320_v26, 0.0 }
  0xe4   :  { %v282_v27 = vpop.f32.mrf.mxu0  ;;  %v322_v28 = vpop.f32.mrf.mxu1 }
  0xe5   :  { %v459_v31 = vmax.f32 %v282_v27, 0.0  ;;  %v475_v32 = vmax.f32 %v322_v28, 0.0 }
  0xe6   :  { %v284_v33 = vpop.f32.mrf.mxu0  ;;  %v324_v34 = vpop.f32.mrf.mxu1 }
  0xe7   :  { %v648_v35 = vpack.c.bf16 %v459_v31, %v458_v29  ;;  %v656_v36 = vpack.c.bf16 %v475_v32, %v474_v30  ;;  %v460_v39 = vmax.f32 %v284_v33, 0.0  ;;  %v476_v40 = vmax.f32 %v324_v34, 0.0 }
  0xe8   :  { %v286_v37 = vpop.f32.mrf.mxu0  ;;  %v326_v38 = vpop.f32.mrf.mxu1 }
  0xe9   :  { %586 = vst [vmem:[%s859_s2] sm:$0xff] %v648_v35  ;;  %594 = vst [vmem:[%s859_s2 + $0x40] sm:$0xff] %v656_v36  ;;  %v461_v41 = vmax.f32 %v286_v37, 0.0  ;;  %v477_v42 = vmax.f32 %v326_v38, 0.0 }
  0xea   :  { %v290_v43 = vpop.f32.mrf.mxu0  ;;  %v330_v44 = vpop.f32.mrf.mxu1 }
  0xeb   :  { %v649_v45 = vpack.c.bf16 %v461_v41, %v460_v39  ;;  %v657_v46 = vpack.c.bf16 %v477_v42, %v476_v40  ;;  %v462_v49 = vmax.f32 %v290_v43, 0.0  ;;  %v478_v50 = vmax.f32 %v330_v44, 0.0 }
  0xec   :  { %v292_v47 = vpop.f32.mrf.mxu0  ;;  %v332_v48 = vpop.f32.mrf.mxu1 }
  0xed   :  { %587 = vst [vmem:[%s859_s2 + $0x8] sm:$0xff] %v649_v45  ;;  %595 = vst [vmem:[%s859_s2 + $0x48] sm:$0xff] %v657_v46  ;;  %v463_v51 = vmax.f32 %v292_v47, 0.0  ;;  %v479_v52 = vmax.f32 %v332_v48, 0.0 }
  0xee   :  { %v294_v53 = vpop.f32.mrf.mxu0  ;;  %v334_v54 = vpop.f32.mrf.mxu1 }
  0xef   :  { %v650_v55 = vpack.c.bf16 %v463_v51, %v462_v49  ;;  %v658_v56 = vpack.c.bf16 %v479_v52, %v478_v50  ;;  %v464_v59 = vmax.f32 %v294_v53, 0.0  ;;  %v480_v60 = vmax.f32 %v334_v54, 0.0 }
  0xf0   :  { %v296_v57 = vpop.f32.mrf.mxu0  ;;  %v336_v58 = vpop.f32.mrf.mxu1 }
  0xf1   :  { %588 = vst [vmem:[%s859_s2 + $0x10] sm:$0xff] %v650_v55  ;;  %596 = vst [vmem:[%s859_s2 + $0x50] sm:$0xff] %v658_v56  ;;  %v465_v61 = vmax.f32 %v296_v57, 0.0  ;;  %v481_v62 = vmax.f32 %v336_v58, 0.0 }
  0xf2   :  { %v300_v63 = vpop.f32.mrf.mxu0  ;;  %v340_v0 = vpop.f32.mrf.mxu1 }
  0xf3   :  { %v651_v1 = vpack.c.bf16 %v465_v61, %v464_v59  ;;  %v659_v2 = vpack.c.bf16 %v481_v62, %v480_v60  ;;  %v466_v5 = vmax.f32 %v300_v63, 0.0  ;;  %v482_v6 = vmax.f32 %v340_v0, 0.0 }
  0xf4   :  { %v302_v3 = vpop.f32.mrf.mxu0  ;;  %v342_v4 = vpop.f32.mrf.mxu1 }
  0xf5   :  { %589 = vst [vmem:[%s859_s2 + $0x18] sm:$0xff] %v651_v1  ;;  %597 = vst [vmem:[%s859_s2 + $0x58] sm:$0xff] %v659_v2  ;;  %v467_v7 = vmax.f32 %v302_v3, 0.0  ;;  %v483_v8 = vmax.f32 %v342_v4, 0.0 }
  0xf6   :  { %v304_v9 = vpop.f32.mrf.mxu0  ;;  %v344_v10 = vpop.f32.mrf.mxu1 }
  0xf7   :  { %v652_v11 = vpack.c.bf16 %v467_v7, %v466_v5  ;;  %v660_v12 = vpack.c.bf16 %v483_v8, %v482_v6  ;;  %v468_v15 = vmax.f32 %v304_v9, 0.0  ;;  %v484_v16 = vmax.f32 %v344_v10, 0.0 }
  0xf8   :  { %v306_v13 = vpop.f32.mrf.mxu0  ;;  %v346_v14 = vpop.f32.mrf.mxu1 }
  0xf9   :  { %590 = vst [vmem:[%s859_s2 + $0x20] sm:$0xff] %v652_v11  ;;  %598 = vst [vmem:[%s859_s2 + $0x60] sm:$0xff] %v660_v12  ;;  %v469_v17 = vmax.f32 %v306_v13, 0.0  ;;  %v485_v18 = vmax.f32 %v346_v14, 0.0 }
  0xfa   :  { %v310_v19 = vpop.f32.mrf.mxu0  ;;  %v350_v20 = vpop.f32.mrf.mxu1 }
  0xfb   :  { %v653_v21 = vpack.c.bf16 %v469_v17, %v468_v15  ;;  %v661_v22 = vpack.c.bf16 %v485_v18, %v484_v16  ;;  %v470_v25 = vmax.f32 %v310_v19, 0.0  ;;  %v486_v26 = vmax.f32 %v350_v20, 0.0 }
  0xfc   :  { %v312_v23 = vpop.f32.mrf.mxu0  ;;  %v352_v24 = vpop.f32.mrf.mxu1 }
  0xfd   :  { %591 = vst [vmem:[%s859_s2 + $0x28] sm:$0xff] %v653_v21  ;;  %599 = vst [vmem:[%s859_s2 + $0x68] sm:$0xff] %v661_v22  ;;  %v471_v27 = vmax.f32 %v312_v23, 0.0  ;;  %v487_v28 = vmax.f32 %v352_v24, 0.0 }
  0xfe   :  { %v314_v29 = vpop.f32.mrf.mxu0  ;;  %v354_v30 = vpop.f32.mrf.mxu1 }
  0xff   :  { %v654_v31 = vpack.c.bf16 %v471_v27, %v470_v25  ;;  %v662_v32 = vpack.c.bf16 %v487_v28, %v486_v26  ;;  %v472_v35 = vmax.f32 %v314_v29, 0.0  ;;  %v488_v36 = vmax.f32 %v354_v30, 0.0 }
 0x100   :  { %v316_v33 = vpop.f32.mrf.mxu0  ;;  %v356_v34 = vpop.f32.mrf.mxu1 }
 0x101   :  { %592 = vst [vmem:[%s859_s2 + $0x30] sm:$0xff] %v654_v31  ;;  %600 = vst [vmem:[%s859_s2 + $0x70] sm:$0xff] %v662_v32  ;;  %v473_v37 = vmax.f32 %v316_v33, 0.0  ;;  %v489_v38 = vmax.f32 %v356_v34, 0.0 }
 0x103   :  { %v655_v39 = vpack.c.bf16 %v473_v37, %v472_v35  ;;  %v663_v40 = vpack.c.bf16 %v489_v38, %v488_v36 }
 0x105   :  { %593 = vst [vmem:[%s859_s2 + $0x38] sm:$0xff] %v655_v39  ;;  %601 = vst [vmem:[%s859_s2 + $0x78] sm:$0xff] %v663_v40 }

// kernel: jnsgsl_forward.23
= control target key start
LH: loop header
LB: loop body
LE: loop exit
PB: predicated region body
PF: predicated region fallthrough
CT: control target
= control target key end

     0   :  { %s464_s1 = inlined_call_operand.vmem [shape: bf16[128,128], index: 1, kind: input, shape index: {}, may-alias: {0,1}]   ;;  %s465_s0 = inlined_call_operand.vmem [shape: bf16[128,128], index: 0, kind: input, shape index: {}, may-alias: {0,1}]   ;;  %s466_s2 = inlined_call_operand.vmem [shape: f32[128,128], index: 2, kind: output, shape index: {}]  }
   0x1   :  { %v337_v0 = vld [vmem:[%s464_s1 + $0x38] sm:$0xff]   ;;  %v338_v1 = vld [vmem:[%s464_s1 + $0x30] sm:$0xff]   ;;  %v339_v2 = vld [vmem:[%s464_s1 + $0x28] sm:$0xff]  }
   0x2   :  { %289 = vmatprep.subr.bf16.mxu0 %v337_v0  ;;  %321 = vmatprep.subr.bf16.mxu1 %v337_v0  ;;  %v345_v3 = vld [vmem:[%s465_s0] sm:$0xff]   ;;  %v341_v6 = vld [vmem:[%s464_s1 + $0x18] sm:$0xff]   ;;  %v342_v7 = vld [vmem:[%s464_s1 + $0x10] sm:$0xff]  }
   0x3   :  { %290 = vmatpush3.bf16.xpose.msra.mxu0 %v337_v0  ;;  %329 = vmatpush3.bf16.xpose.msra.mxu1 %v337_v0  ;;  %v346_v4 = vld [vmem:[%s465_s0 + $0x20] sm:$0xff]   ;;  %v343_v8 = vld [vmem:[%s464_s1 + $0x8] sm:$0xff]   ;;  %v349_v12 = vld [vmem:[%s465_s0 + $0x10] sm:$0xff]  }
   0x4   :  { %291 = vmatprep.subr.bf16.mxu0 %v338_v1  ;;  %322 = vmatprep.subr.bf16.mxu1 %v338_v1  ;;  %v340_v5 = vld [vmem:[%s464_s1 + $0x20] sm:$0xff]   ;;  %v347_v10 = vld [vmem:[%s465_s0 + $0x8] sm:$0xff]   ;;  %v350_v13 = vld [vmem:[%s465_s0 + $0x30] sm:$0xff]  }
   0x5   :  { %305 = vmatprep.mubr.bf16.mxu0 %v345_v3  ;;  %313 = vmatprep.mubr.bf16.mxu1 %v346_v4  ;;  %v344_v9 = vld [vmem:[%s464_s1] sm:$0xff]   ;;  %v348_v11 = vld [vmem:[%s465_s0 + $0x28] sm:$0xff]   ;;  %v351_v14 = vld [vmem:[%s465_s0 + $0x18] sm:$0xff]  }
   0x6   :  { %v352_v15 = vld [vmem:[%s465_s0 + $0x38] sm:$0xff]  }
   0xb   :  { %292 = vmatpush3.bf16.xpose.msra.mxu0 %v338_v1  ;;  %330 = vmatpush3.bf16.xpose.msra.mxu1 %v338_v1 }
   0xc   :  { %293 = vmatprep.subr.bf16.mxu0 %v339_v2  ;;  %323 = vmatprep.subr.bf16.mxu1 %v339_v2 }
  0x13   :  { %294 = vmatpush3.bf16.xpose.msra.mxu0 %v339_v2  ;;  %331 = vmatpush3.bf16.xpose.msra.mxu1 %v339_v2 }
  0x14   :  { %295 = vmatprep.subr.bf16.mxu0 %v340_v5  ;;  %324 = vmatprep.subr.bf16.mxu1 %v340_v5 }
  0x1b   :  { %296 = vmatpush3.bf16.xpose.msra.mxu0 %v340_v5  ;;  %332 = vmatpush3.bf16.xpose.msra.mxu1 %v340_v5 }
  0x1c   :  { %297 = vmatprep.subr.bf16.mxu0 %v341_v6  ;;  %325 = vmatprep.subr.bf16.mxu1 %v341_v6 }
  0x23   :  { %298 = vmatpush3.bf16.xpose.msra.mxu0 %v341_v6  ;;  %333 = vmatpush3.bf16.xpose.msra.mxu1 %v341_v6 }
  0x24   :  { %299 = vmatprep.subr.bf16.mxu0 %v342_v7  ;;  %326 = vmatprep.subr.bf16.mxu1 %v342_v7 }
  0x2b   :  { %300 = vmatpush3.bf16.xpose.msra.mxu0 %v342_v7  ;;  %334 = vmatpush3.bf16.xpose.msra.mxu1 %v342_v7 }
  0x2c   :  { %301 = vmatprep.subr.bf16.mxu0 %v343_v8  ;;  %327 = vmatprep.subr.bf16.mxu1 %v343_v8 }
  0x33   :  { %302 = vmatpush3.bf16.xpose.msra.mxu0 %v343_v8  ;;  %335 = vmatpush3.bf16.xpose.msra.mxu1 %v343_v8 }
  0x34   :  { %303 = vmatprep.subr.bf16.mxu0 %v344_v9  ;;  %328 = vmatprep.subr.bf16.mxu1 %v344_v9 }
  0x3b   :  { %304 = vmatpush3.bf16.xpose.msra.mxu0 %v344_v9  ;;  %336 = vmatpush3.bf16.xpose.msra.mxu1 %v344_v9 }
  0x42   :  { %306 = vmatmul.mubr.bf16.vlgmr.msra.gmra.mxu0 %v347_v10  ;;  %314 = vmatmul.mubr.bf16.vlgmr.msra.gmra.mxu1 %v348_v11 }
  0x43   :  { %309 = vmatprep.mubr.bf16.mxu0 %v349_v12  ;;  %317 = vmatprep.mubr.bf16.mxu1 %v350_v13 }
  0x4a   :  { %310 = vmatmul.mubr.bf16.gmra.mxu0 %v351_v14  ;;  %318 = vmatmul.mubr.bf16.gmra.mxu1 %v352_v15 }
 0x102   :  { %v307_v16 = vpop.f32.mrf.mxu0  ;;  %v315_v17 = vpop.f32.mrf.mxu1 }
 0x103   :  { %239 = vst [vmem:[%s466_s2 + $0x10] sm:$0xff] %v307_v16  ;;  %247 = vst [vmem:[%s466_s2 + $0x50] sm:$0xff] %v315_v17 }
 0x104   :  { %v174_v18 = vpop.f32.mrf.mxu0  ;;  %v206_v19 = vpop.f32.mrf.mxu1 }
 0x105   :  { %237 = vst [vmem:[%s466_s2] sm:$0xff] %v174_v18  ;;  %245 = vst [vmem:[%s466_s2 + $0x40] sm:$0xff] %v206_v19 }
 0x106   :  { %v308_v20 = vpop.f32.mrf.mxu0  ;;  %v316_v21 = vpop.f32.mrf.mxu1 }
 0x107   :  { %240 = vst [vmem:[%s466_s2 + $0x18] sm:$0xff] %v308_v20  ;;  %248 = vst [vmem:[%s466_s2 + $0x58] sm:$0xff] %v316_v21 }
 0x108   :  { %v177_v22 = vpop.f32.mrf.mxu0  ;;  %v209_v23 = vpop.f32.mrf.mxu1 }
 0x109   :  { %238 = vst [vmem:[%s466_s2 + $0x8] sm:$0xff] %v177_v22  ;;  %246 = vst [vmem:[%s466_s2 + $0x48] sm:$0xff] %v209_v23 }
 0x10a   :  { %v311_v24 = vpop.f32.mrf.mxu0  ;;  %v319_v25 = vpop.f32.mrf.mxu1 }
 0x10b   :  { %243 = vst [vmem:[%s466_s2 + $0x30] sm:$0xff] %v311_v24  ;;  %251 = vst [vmem:[%s466_s2 + $0x70] sm:$0xff] %v319_v25 }
 0x10c   :  { %v190_v26 = vpop.f32.mrf.mxu0  ;;  %v222_v27 = vpop.f32.mrf.mxu1 }
 0x10d   :  { %241 = vst [vmem:[%s466_s2 + $0x20] sm:$0xff] %v190_v26  ;;  %249 = vst [vmem:[%s466_s2 + $0x60] sm:$0xff] %v222_v27 }
 0x10e   :  { %v312_v28 = vpop.f32.mrf.mxu0  ;;  %v320_v29 = vpop.f32.mrf.mxu1 }
 0x10f   :  { %244 = vst [vmem:[%s466_s2 + $0x38] sm:$0xff] %v312_v28  ;;  %252 = vst [vmem:[%s466_s2 + $0x78] sm:$0xff] %v320_v29 }
 0x110   :  { %v193_v30 = vpop.f32.mrf.mxu0  ;;  %v225_v31 = vpop.f32.mrf.mxu1 }
 0x111   :  { %242 = vst [vmem:[%s466_s2 + $0x28] sm:$0xff] %v193_v30  ;;  %250 = vst [vmem:[%s466_s2 + $0x68] sm:$0xff] %v225_v31 }

// kernel: jnsgsl_forward.28
= control target key start
LH: loop header
LB: loop body
LE: loop exit
PB: predicated region body
PF: predicated region fallthrough
CT: control target
= control target key end

     0   :  { %v645_v3 = vmov 0   ;;  %s810_s1 = inlined_call_operand.vmem [shape: f32[128,128], index: 1, kind: input, shape index: {}]   ;;  %s811_s0 = inlined_call_operand.vmem [shape: bf16[128,128], index: 0, kind: input, shape index: {}]   ;;  %s812_s2 = inlined_call_operand.vmem [shape: f32[128,1], index: 2, kind: input, shape index: {}]   ;;  %s813_s3 = inlined_call_operand.vmem [shape: bf16[128,128], index: 3, kind: output, shape index: {}]  }
   0x1   :  { %v81_v0 = vld [vmem:[%s810_s1 + $0x70] sm:$0xff]  ;;  %v82_v1 = vld [vmem:[%s810_s1 + $0x78] sm:$0xff]  ;;  %v79_v2 = vld [vmem:[%s810_s1 + $0x60] sm:$0xff]  ;;  %636 = vset.pattern.permute.xlu1 %v645_v3  ;;  %635 = vset.pattern.permute.xlu0 %v645_v3 }
   0x2   :  { %v90_v4 = vpack.c.bf16 %v82_v1, %v81_v0  ;;  %v80_v5 = vld [vmem:[%s810_s1 + $0x68] sm:$0xff]  ;;  %v77_v7 = vld [vmem:[%s810_s1 + $0x50] sm:$0xff]  ;;  %v78_v8 = vld [vmem:[%s810_s1 + $0x58] sm:$0xff] }
   0x3   :  { %v89_v6 = vpack.c.bf16 %v80_v5, %v79_v2  ;;  %v75_v9 = vld [vmem:[%s810_s1 + $0x40] sm:$0xff]  ;;  %v88_v10 = vpack.c.bf16 %v78_v8, %v77_v7  ;;  %v76_v11 = vld [vmem:[%s810_s1 + $0x48] sm:$0xff]  ;;  %v73_v15 = vld [vmem:[%s810_s1 + $0x30] sm:$0xff] }
   0x4   :  { %586 = vmatprep.subr.bf16.mxu0 %v90_v4  ;;  %618 = vmatprep.subr.bf16.mxu1 %v90_v4  ;;  %v637_v12 = vld [vmem:[%s811_s0] sm:$0xff]   ;;  %v87_v14 = vpack.c.bf16 %v76_v11, %v75_v9  ;;  %v74_v16 = vld [vmem:[%s810_s1 + $0x38] sm:$0xff]  ;;  %v289_v18 = vld [vmem:[%s812_s2 + $0x10] sm:$0xff] }
   0x5   :  { %587 = vmatpush3.bf16.msra.mxu0 %v90_v4  ;;  %626 = vmatpush3.bf16.msra.mxu1 %v90_v4  ;;  %v638_v13 = vld [vmem:[%s811_s0 + $0x20] sm:$0xff]   ;;  %v86_v17 = vpack.c.bf16 %v74_v16, %v73_v15  ;;  %v72_v21 = vld [vmem:[%s810_s1 + $0x28] sm:$0xff]  ;;  %v290_v22 = vld [vmem:[%s812_s2 + $0x18] sm:$0xff] }
   0x6   :  { %588 = vmatprep.subr.bf16.mxu0 %v89_v6  ;;  %619 = vmatprep.subr.bf16.mxu1 %v89_v6  ;;  %v287_v19 = vld [vmem:[%s812_s2] sm:$0xff]  ;;  %v288_v23 = vld [vmem:[%s812_s2 + $0x8] sm:$0xff]  ;;  %v69_v25 = vld [vmem:[%s810_s1 + $0x10] sm:$0xff] }
   0x7   :  { %602 = vmatprep.mubr.bf16.mxu0 %v637_v12  ;;  %610 = vmatprep.mubr.bf16.mxu1 %v638_v13  ;;  %v71_v20 = vld [vmem:[%s810_s1 + $0x20] sm:$0xff]  ;;  %v70_v26 = vld [vmem:[%s810_s1 + $0x18] sm:$0xff]  ;;  %v292_v27 = vld [vmem:[%s812_s2 + $0x28] sm:$0xff] }
   0x8   :  { %315 = vperm.xlu1 %636, %v289_v18   ;;  %305 = vperm.xlu0 %635, %v287_v19   ;;  %v85_v24 = vpack.c.bf16 %v72_v21, %v71_v20  ;;  %v291_v28 = vld [vmem:[%s812_s2 + $0x20] sm:$0xff]  ;;  %v84_v29 = vpack.c.bf16 %v70_v26, %v69_v25  ;;  %v68_v31 = vld [vmem:[%s810_s1 + $0x8] sm:$0xff]  ;;  %v294_v32 = vld [vmem:[%s812_s2 + $0x38] sm:$0xff] }
   0x9   :  { %589 = vmatpush3.bf16.msra.mxu0 %v89_v6  ;;  %627 = vmatpush3.bf16.msra.mxu1 %v89_v6  ;;  %v67_v30 = vld [vmem:[%s810_s1] sm:$0xff]  ;;  %v293_v33 = vld [vmem:[%s812_s2 + $0x30] sm:$0xff]  ;;  %v296_v35 = vld [vmem:[%s812_s2 + $0x48] sm:$0xff] }
   0xa   :  { %590 = vmatprep.subr.bf16.mxu0 %v88_v10  ;;  %620 = vmatprep.subr.bf16.mxu1 %v88_v10  ;;  %v83_v34 = vpack.c.bf16 %v68_v31, %v67_v30  ;;  %v295_v36 = vld [vmem:[%s812_s2 + $0x40] sm:$0xff]  ;;  %v639_v37 = vld [vmem:[%s811_s0 + $0x8] sm:$0xff]   ;;  %v298_v39 = vld [vmem:[%s812_s2 + $0x58] sm:$0xff] }
   0xb   :  { %v640_v38 = vld [vmem:[%s811_s0 + $0x28] sm:$0xff]   ;;  %v297_v40 = vld [vmem:[%s812_s2 + $0x50] sm:$0xff]  ;;  %v299_v44 = vld [vmem:[%s812_s2 + $0x60] sm:$0xff] }
   0xc   :  { %320 = vperm.xlu1 %636, %v290_v22   ;;  %310 = vperm.xlu0 %635, %v288_v23   ;;  %v641_v41 = vld [vmem:[%s811_s0 + $0x10] sm:$0xff]   ;;  %v300_v43 = vld [vmem:[%s812_s2 + $0x68] sm:$0xff]  ;;  %v643_v45 = vld [vmem:[%s811_s0 + $0x18] sm:$0xff]  }
   0xd   :  { %591 = vmatpush3.bf16.msra.mxu0 %v88_v10  ;;  %628 = vmatpush3.bf16.msra.mxu1 %v88_v10  ;;  %v642_v42 = vld [vmem:[%s811_s0 + $0x30] sm:$0xff]   ;;  %v644_v46 = vld [vmem:[%s811_s0 + $0x38] sm:$0xff]  }
   0xe   :  { %592 = vmatprep.subr.bf16.mxu0 %v87_v14  ;;  %621 = vmatprep.subr.bf16.mxu1 %v87_v14  ;;  %v302_v47 = vld [vmem:[%s812_s2 + $0x78] sm:$0xff]  ;;  %v301_v48 = vld [vmem:[%s812_s2 + $0x70] sm:$0xff] }
  0x10   :  { %330 = vperm.xlu1 %636, %v292_v27   ;;  %325 = vperm.xlu0 %635, %v291_v28  }
  0x11   :  { %593 = vmatpush3.bf16.msra.mxu0 %v87_v14  ;;  %629 = vmatpush3.bf16.msra.mxu1 %v87_v14 }
  0x12   :  { %594 = vmatprep.subr.bf16.mxu0 %v86_v17  ;;  %622 = vmatprep.subr.bf16.mxu1 %v86_v17 }
  0x14   :  { %340 = vperm.xlu1 %636, %v294_v32   ;;  %335 = vperm.xlu0 %635, %v293_v33  }
  0x15   :  { %595 = vmatpush3.bf16.msra.mxu0 %v86_v17  ;;  %630 = vmatpush3.bf16.msra.mxu1 %v86_v17 }
  0x16   :  { %596 = vmatprep.subr.bf16.mxu0 %v85_v24  ;;  %623 = vmatprep.subr.bf16.mxu1 %v85_v24 }
  0x18   :  { %350 = vperm.xlu1 %636, %v296_v35   ;;  %345 = vperm.xlu0 %635, %v295_v36  }
  0x19   :  { %597 = vmatpush3.bf16.msra.mxu0 %v85_v24  ;;  %631 = vmatpush3.bf16.msra.mxu1 %v85_v24 }
  0x1a   :  { %598 = vmatprep.subr.bf16.mxu0 %v84_v29  ;;  %624 = vmatprep.subr.bf16.mxu1 %v84_v29 }
  0x1c   :  { %360 = vperm.xlu1 %636, %v298_v39   ;;  %355 = vperm.xlu0 %635, %v297_v40  }
  0x1d   :  { %599 = vmatpush3.bf16.msra.mxu0 %v84_v29  ;;  %632 = vmatpush3.bf16.msra.mxu1 %v84_v29 }
  0x1e   :  { %600 = vmatprep.subr.bf16.mxu0 %v83_v34  ;;  %625 = vmatprep.subr.bf16.mxu1 %v83_v34 }
  0x20   :  { %370 = vperm.xlu1 %636, %v300_v43   ;;  %365 = vperm.xlu0 %635, %v299_v44  }
  0x21   :  { %601 = vmatpush3.bf16.msra.mxu0 %v83_v34  ;;  %633 = vmatpush3.bf16.msra.mxu1 %v83_v34 }
  0x24   :  { %603 = vmatmul.mubr.bf16.vlgmr.msra.gmra.mxu0 %v639_v37  ;;  %611 = vmatmul.mubr.bf16.vlgmr.msra.gmra.mxu1 %v640_v38 }
  0x25   :  { %606 = vmatprep.mubr.bf16.mxu0 %v641_v41  ;;  %614 = vmatprep.mubr.bf16.mxu1 %v642_v42 }
  0x26   :  { %380 = vperm.xlu1 %636, %v302_v47   ;;  %375 = vperm.xlu0 %635, %v301_v48  }
  0x2c   :  { %607 = vmatmul.mubr.bf16.gmra.mxu0 %v643_v45  ;;  %615 = vmatmul.mubr.bf16.gmra.mxu1 %v644_v46 }
  0x83   :  { %v316_v49 = vpop.permute.xlu1 %315  ;;  %v306_v50 = vpop.permute.xlu0 %305 }
  0x87   :  { %v321_v51 = vpop.permute.xlu1 %320  ;;  %v311_v52 = vpop.permute.xlu0 %310 }
  0x8b   :  { %v331_v53 = vpop.permute.xlu1 %330  ;;  %v326_v54 = vpop.permute.xlu0 %325 }
  0x8f   :  { %v341_v55 = vpop.permute.xlu1 %340  ;;  %v336_v56 = vpop.permute.xlu0 %335 }
  0x93   :  { %v351_v57 = vpop.permute.xlu1 %350  ;;  %v346_v58 = vpop.permute.xlu0 %345 }
  0x97   :  { %v361_v59 = vpop.permute.xlu1 %360  ;;  %v356_v60 = vpop.permute.xlu0 %355 }
  0x9b   :  { %v371_v3 = vpop.permute.xlu1 %370  ;;  %v366_v4 = vpop.permute.xlu0 %365 }
  0xa1   :  { %v381_v23 = vpop.permute.xlu1 %380  ;;  %v376_v24 = vpop.permute.xlu0 %375 }
  0xe4   :  { %v604_v61 = vpop.f32.mrf.mxu0  ;;  %v612_v62 = vpop.f32.mrf.mxu1 }
  0xe5   :  { %v385_v5 = vmul.f32 %v604_v61, %v316_v49  ;;  %v393_v6 = vmul.f32 %v612_v62, %v356_v60 }
  0xe6   :  { %v173_v63 = vpop.f32.mrf.mxu0  ;;  %v205_v0 = vpop.f32.mrf.mxu1 }
  0xe7   :  { %v383_v9 = vmul.f32 %v306_v50, %v173_v63  ;;  %v391_v10 = vmul.f32 %v346_v58, %v205_v0 }
  0xe8   :  { %v605_v1 = vpop.f32.mrf.mxu0  ;;  %v613_v2 = vpop.f32.mrf.mxu1 }
  0xe9   :  { %v386_v7 = vmul.f32 %v605_v1, %v321_v51  ;;  %v394_v8 = vmul.f32 %v613_v2, %v361_v59 }
  0xea   :  { %v176_v11 = vpop.f32.mrf.mxu0  ;;  %v208_v12 = vpop.f32.mrf.mxu1 }
  0xeb   :  { %v531_v13 = vpack.c.bf16 %v386_v7, %v385_v5  ;;  %v551_v14 = vpack.c.bf16 %v394_v8, %v393_v6  ;;  %v384_v15 = vmul.f32 %v311_v52, %v176_v11  ;;  %v392_v16 = vmul.f32 %v351_v57, %v208_v12 }
  0xec   :  { %v608_v17 = vpop.f32.mrf.mxu0  ;;  %v616_v18 = vpop.f32.mrf.mxu1 }
  0xed   :  { %563 = vst [vmem:[%s813_s3 + $0x8] sm:$0xff] %v531_v13   ;;  %567 = vst [vmem:[%s813_s3 + $0x28] sm:$0xff] %v551_v14   ;;  %v526_v19 = vpack.c.bf16 %v384_v15, %v383_v9  ;;  %v546_v20 = vpack.c.bf16 %v392_v16, %v391_v10  ;;  %v389_v27 = vmul.f32 %v608_v17, %v336_v56 }
  0xee   :  { %v189_v21 = vpop.f32.mrf.mxu0  ;;  %v221_v22 = vpop.f32.mrf.mxu1  ;;  %v397_v28 = vmul.f32 %v616_v18, %v376_v24 }
  0xef   :  { %527 = vst [vmem:[%s813_s3] sm:$0xff] %v526_v19   ;;  %566 = vst [vmem:[%s813_s3 + $0x20] sm:$0xff] %v546_v20   ;;  %v387_v31 = vmul.f32 %v326_v54, %v189_v21  ;;  %v395_v32 = vmul.f32 %v366_v4, %v221_v22 }
  0xf0   :  { %v609_v25 = vpop.f32.mrf.mxu0  ;;  %v617_v26 = vpop.f32.mrf.mxu1 }
  0xf1   :  { %v390_v29 = vmul.f32 %v609_v25, %v341_v55  ;;  %v398_v30 = vmul.f32 %v617_v26, %v381_v23 }
  0xf2   :  { %v192_v33 = vpop.f32.mrf.mxu0  ;;  %v224_v34 = vpop.f32.mrf.mxu1 }
  0xf3   :  { %v541_v35 = vpack.c.bf16 %v390_v29, %v389_v27  ;;  %v561_v36 = vpack.c.bf16 %v398_v30, %v397_v28  ;;  %v388_v37 = vmul.f32 %v331_v53, %v192_v33  ;;  %v396_v38 = vmul.f32 %v371_v3, %v224_v34 }
  0xf5   :  { %565 = vst [vmem:[%s813_s3 + $0x18] sm:$0xff] %v541_v35   ;;  %569 = vst [vmem:[%s813_s3 + $0x38] sm:$0xff] %v561_v36   ;;  %v536_v39 = vpack.c.bf16 %v388_v37, %v387_v31  ;;  %v556_v40 = vpack.c.bf16 %v396_v38, %v395_v32 }
  0xf7   :  { %564 = vst [vmem:[%s813_s3 + $0x10] sm:$0xff] %v536_v39   ;;  %568 = vst [vmem:[%s813_s3 + $0x30] sm:$0xff] %v556_v40  }

// kernel: jnsgsl_forward.31
= control target key start
LH: loop header
LB: loop body
LE: loop exit
PB: predicated region body
PF: predicated region fallthrough
CT: control target
= control target key end

     0   :  { %v668_v2 = vmov 0   ;;  %s938_s1 = inlined_call_operand.vmem [shape: bf16[128,128], index: 1, kind: input, shape index: {}]   ;;  %s939_s0 = inlined_call_operand.vmem [shape: bf16[128,128], index: 0, kind: input, shape index: {}]   ;;  %s940_s2 = inlined_call_operand.vmem [shape: f32[128,1], index: 2, kind: input, shape index: {}]   ;;  %s941_s3 = inlined_call_operand.vmem [shape: f32[1,128], index: 3, kind: input, shape index: {}]   ;;  %s942_s4 = inlined_call_operand.vmem [shape: f32[128,128], index: 4, kind: output, shape index: {}]  }
   0x1   :  { %v697_v0 = vld [vmem:[%s938_s1 + $0x38] sm:$0xff]   ;;  %v702_v1 = vld [vmem:[%s938_s1 + $0x30] sm:$0xff]   ;;  %643 = vset.pattern.permute.xlu1 %v668_v2  ;;  %642 = vset.pattern.permute.xlu0 %v668_v2  ;;  %v707_v3 = vld [vmem:[%s938_s1 + $0x28] sm:$0xff]  }
   0x2   :  { %593 = vmatprep.subr.bf16.mxu0 %v697_v0  ;;  %625 = vmatprep.subr.bf16.mxu1 %v697_v0  ;;  %v652_v4 = vld [vmem:[%s939_s0] sm:$0xff]   ;;  %v733_v7 = vld [vmem:[%s938_s1 + $0x18] sm:$0xff]   ;;  %v405_v8 = vld [vmem:[%s940_s2 + $0x10] sm:$0xff]  ;;  %v346_v45 = vunpack.c.l.bf16 %v707_v3  ;;  %v347_v57 = vunpack.c.h.bf16 %v707_v3 }
   0x3   :  { %594 = vmatpush3.bf16.msra.mxu0 %v697_v0  ;;  %633 = vmatpush3.bf16.msra.mxu1 %v697_v0  ;;  %v653_v5 = vld [vmem:[%s939_s0 + $0x20] sm:$0xff]   ;;  %v406_v10 = vld [vmem:[%s940_s2 + $0x18] sm:$0xff]  ;;  %v751_v11 = vld [vmem:[%s938_s1 + $0x10] sm:$0xff]  }
   0x4   :  { %595 = vmatprep.subr.bf16.mxu0 %v702_v1  ;;  %626 = vmatprep.subr.bf16.mxu1 %v702_v1  ;;  %v724_v6 = vld [vmem:[%s938_s1 + $0x20] sm:$0xff]   ;;  %v404_v12 = vld [vmem:[%s940_s2 + $0x8] sm:$0xff]  ;;  %v410_v16 = vld [vmem:[%s940_s2 + $0x38] sm:$0xff] }
   0x5   :  { %609 = vmatprep.mubr.bf16.mxu0 %v652_v4  ;;  %617 = vmatprep.mubr.bf16.mxu1 %v653_v5  ;;  %v403_v9 = vld [vmem:[%s940_s2] sm:$0xff]  ;;  %v408_v13 = vld [vmem:[%s940_s2 + $0x28] sm:$0xff]  ;;  %v409_v18 = vld [vmem:[%s940_s2 + $0x30] sm:$0xff]  ;;  %v344_v47 = vunpack.c.l.bf16 %v724_v6  ;;  %v345_v59 = vunpack.c.h.bf16 %v724_v6 }
   0x6   :  { %431 = vperm.xlu1 %643, %v405_v8   ;;  %421 = vperm.xlu0 %642, %v403_v9   ;;  %v766_v14 = vld [vmem:[%s938_s1 + $0x8] sm:$0xff]   ;;  %v407_v15 = vld [vmem:[%s940_s2 + $0x20] sm:$0xff]  ;;  %v414_v21 = vld [vmem:[%s940_s2 + $0x58] sm:$0xff]  ;;  %v342_v8 = vunpack.c.l.bf16 %v733_v7  ;;  %v350_v9 = vunpack.c.l.bf16 %v697_v0 }
   0x7   :  { %596 = vmatpush3.bf16.msra.mxu0 %v702_v1  ;;  %634 = vmatpush3.bf16.msra.mxu1 %v702_v1  ;;  %v781_v17 = vld [vmem:[%s938_s1] sm:$0xff]   ;;  %v412_v19 = vld [vmem:[%s940_s2 + $0x48] sm:$0xff]  ;;  %v413_v24 = vld [vmem:[%s940_s2 + $0x50] sm:$0xff]  ;;  %v338_v44 = vunpack.c.l.bf16 %v766_v14  ;;  %v339_v56 = vunpack.c.h.bf16 %v766_v14 }
   0x8   :  { %597 = vmatprep.subr.bf16.mxu0 %v707_v3  ;;  %627 = vmatprep.subr.bf16.mxu1 %v707_v3  ;;  %v411_v20 = vld [vmem:[%s940_s2 + $0x40] sm:$0xff]  ;;  %v654_v22 = vld [vmem:[%s939_s0 + $0x8] sm:$0xff]   ;;  %v656_v25 = vld [vmem:[%s939_s0 + $0x10] sm:$0xff]   ;;  %v336_v46 = vunpack.c.l.bf16 %v781_v17  ;;  %v337_v58 = vunpack.c.h.bf16 %v781_v17 }
   0x9   :  { %v655_v23 = vld [vmem:[%s939_s0 + $0x28] sm:$0xff]   ;;  %v657_v26 = vld [vmem:[%s939_s0 + $0x30] sm:$0xff]   ;;  %v415_v28 = vld [vmem:[%s940_s2 + $0x60] sm:$0xff] }
   0xa   :  { %436 = vperm.xlu1 %643, %v406_v10   ;;  %426 = vperm.xlu0 %642, %v404_v12   ;;  %v416_v27 = vld [vmem:[%s940_s2 + $0x68] sm:$0xff]  ;;  %v418_v29 = vld [vmem:[%s940_s2 + $0x78] sm:$0xff]  ;;  %v417_v32 = vld [vmem:[%s940_s2 + $0x70] sm:$0xff] }
   0xb   :  { %598 = vmatpush3.bf16.msra.mxu0 %v707_v3  ;;  %635 = vmatpush3.bf16.msra.mxu1 %v707_v3  ;;  %v658_v30 = vld [vmem:[%s939_s0 + $0x18] sm:$0xff]   ;;  %v853_v53 = vld [vmem:[%s941_s3] ss:$0 sm:$0xff] }
   0xc   :  { %599 = vmatprep.subr.bf16.mxu0 %v724_v6  ;;  %628 = vmatprep.subr.bf16.mxu1 %v724_v6  ;;  %v659_v31 = vld [vmem:[%s939_s0 + $0x38] sm:$0xff]  }
   0xe   :  { %446 = vperm.xlu1 %643, %v408_v13   ;;  %441 = vperm.xlu0 %642, %v407_v15  }
   0xf   :  { %600 = vmatpush3.bf16.msra.mxu0 %v724_v6  ;;  %636 = vmatpush3.bf16.msra.mxu1 %v724_v6 }
  0x10   :  { %601 = vmatprep.subr.bf16.mxu0 %v733_v7  ;;  %629 = vmatprep.subr.bf16.mxu1 %v733_v7 }
  0x12   :  { %456 = vperm.xlu1 %643, %v410_v16   ;;  %451 = vperm.xlu0 %642, %v409_v18   ;;  %v348_v18 = vunpack.c.l.bf16 %v702_v1 }
  0x13   :  { %602 = vmatpush3.bf16.msra.mxu0 %v733_v7  ;;  %637 = vmatpush3.bf16.msra.mxu1 %v733_v7 }
  0x14   :  { %603 = vmatprep.subr.bf16.mxu0 %v751_v11  ;;  %630 = vmatprep.subr.bf16.mxu1 %v751_v11 }
  0x16   :  { %466 = vperm.xlu1 %643, %v412_v19   ;;  %461 = vperm.xlu0 %642, %v411_v20  }
  0x17   :  { %604 = vmatpush3.bf16.msra.mxu0 %v751_v11  ;;  %638 = vmatpush3.bf16.msra.mxu1 %v751_v11 }
  0x18   :  { %605 = vmatprep.subr.bf16.mxu0 %v766_v14  ;;  %631 = vmatprep.subr.bf16.mxu1 %v766_v14 }
  0x1a   :  { %476 = vperm.xlu1 %643, %v414_v21   ;;  %471 = vperm.xlu0 %642, %v413_v24  }
  0x1b   :  { %606 = vmatpush3.bf16.msra.mxu0 %v766_v14  ;;  %639 = vmatpush3.bf16.msra.mxu1 %v766_v14 }
  0x1c   :  { %607 = vmatprep.subr.bf16.mxu0 %v781_v17  ;;  %632 = vmatprep.subr.bf16.mxu1 %v781_v17 }
  0x1e   :  { %486 = vperm.xlu1 %643, %v416_v27   ;;  %481 = vperm.xlu0 %642, %v415_v28   ;;  %v343_v28 = vunpack.c.h.bf16 %v733_v7 }
  0x1f   :  { %608 = vmatpush3.bf16.msra.mxu0 %v781_v17  ;;  %640 = vmatpush3.bf16.msra.mxu1 %v781_v17  ;;  %v340_v17 = vunpack.c.l.bf16 %v751_v11 }
  0x22   :  { %610 = vmatmul.mubr.bf16.vlgmr.msra.gmra.mxu0 %v654_v22  ;;  %618 = vmatmul.mubr.bf16.vlgmr.msra.gmra.mxu1 %v655_v23 }
  0x23   :  { %613 = vmatprep.mubr.bf16.mxu0 %v656_v25  ;;  %621 = vmatprep.mubr.bf16.mxu1 %v657_v26 }
  0x24   :  { %496 = vperm.xlu1 %643, %v418_v29   ;;  %491 = vperm.xlu0 %642, %v417_v32   ;;  %v351_v29 = vunpack.c.h.bf16 %v697_v0  ;;  %v341_v0 = vunpack.c.h.bf16 %v751_v11 }
  0x2a   :  { %614 = vmatmul.mubr.bf16.gmra.mxu0 %v658_v30  ;;  %622 = vmatmul.mubr.bf16.gmra.mxu1 %v659_v31 }
  0x81   :  { %v422_v33 = vpop.permute.xlu0 %421  ;;  %v432_v34 = vpop.permute.xlu1 %431 }
  0x85   :  { %v427_v35 = vpop.permute.xlu0 %426  ;;  %v437_v36 = vpop.permute.xlu1 %436 }
  0x89   :  { %v838_v37 = vpop.permute.xlu0 %441  ;;  %v840_v38 = vpop.permute.xlu1 %446 }
  0x8d   :  { %v842_v39 = vpop.permute.xlu0 %451  ;;  %v844_v40 = vpop.permute.xlu1 %456 }
  0x91   :  { %v462_v41 = vpop.permute.xlu0 %461  ;;  %v467_v42 = vpop.permute.xlu1 %466 }
  0x95   :  { %v472_v43 = vpop.permute.xlu0 %471  ;;  %v477_v50 = vpop.permute.xlu1 %476 }
  0x99   :  { %v859_v60 = vpop.permute.xlu0 %481  ;;  %v487_v19 = vpop.permute.xlu1 %486 }
  0x9f   :  { %v492_v30 = vpop.permute.xlu0 %491 }
  0xe2   :  { %v611_v48 = vpop.f32.mrf.mxu0  ;;  %v619_v49 = vpop.f32.mrf.mxu1 }
  0xe3   :  { %v354_v51 = vadd.f32 %v611_v48, %v338_v44  ;;  %v362_v52 = vadd.f32 %v619_v49, %v346_v45  ;;  %v349_v44 = vunpack.c.h.bf16 %v702_v1  ;;  %v497_v1 = vpop.permute.xlu1 %496 }
  0xe4   :  { %v221_v54 = vpop.f32.mrf.mxu0  ;;  %v253_v55 = vpop.f32.mrf.mxu1 }
  0xe5   :  { %v501_v61 = vmul.f32 %v432_v34, %v354_v51  ;;  %v509_v62 = vmul.f32 %v472_v43, %v362_v52  ;;  %v352_v63 = vadd.f32 %v336_v46, %v221_v54  ;;  %v360_v2 = vadd.f32 %v344_v47, %v253_v55 }
  0xe6   :  { %v612_v4 = vpop.f32.mrf.mxu0  ;;  %v620_v5 = vpop.f32.mrf.mxu1 }
  0xe7   :  { %v524_v10 = vadd.f32 %v853_v53, %v501_v61  ;;  %v532_v3 = vadd.f32 %v853_v53, %v509_v62  ;;  %v499_v12 = vmul.f32 %v422_v33, %v352_v63  ;;  %v507_v13 = vmul.f32 %v462_v41, %v360_v2 }
  0xe8   :  { %v355_v14 = vadd.f32 %v612_v4, %v339_v56  ;;  %v363_v6 = vadd.f32 %v620_v5, %v347_v57  ;;  %v224_v15 = vpop.f32.mrf.mxu0  ;;  %v256_v16 = vpop.f32.mrf.mxu1 }
  0xe9   :  { %540 = vst [vmem:[%s942_s4 + $0x10] sm:$0xff] %v524_v10  ;;  %548 = vst [vmem:[%s942_s4 + $0x50] sm:$0xff] %v532_v3  ;;  %v522_v20 = vadd.f32 %v853_v53, %v499_v12  ;;  %v530_v21 = vadd.f32 %v853_v53, %v507_v13  ;;  %v353_v22 = vadd.f32 %v337_v58, %v224_v15 }
  0xea   :  { %v361_v23 = vadd.f32 %v345_v59, %v256_v16  ;;  %v502_v24 = vmul.f32 %v437_v36, %v355_v14  ;;  %v510_v25 = vmul.f32 %v477_v50, %v363_v6  ;;  %v615_v26 = vpop.f32.mrf.mxu0  ;;  %v623_v27 = vpop.f32.mrf.mxu1 }
  0xeb   :  { %538 = vst [vmem:[%s942_s4] sm:$0xff] %v522_v20  ;;  %546 = vst [vmem:[%s942_s4 + $0x40] sm:$0xff] %v530_v21  ;;  %v500_v31 = vmul.f32 %v427_v35, %v353_v22  ;;  %v358_v33 = vadd.f32 %v615_v26, %v342_v8  ;;  %v366_v34 = vadd.f32 %v623_v27, %v350_v9 }
  0xec   :  { %v508_v32 = vmul.f32 %v467_v42, %v361_v23  ;;  %v525_v36 = vadd.f32 %v853_v53, %v502_v24  ;;  %v533_v41 = vadd.f32 %v853_v53, %v510_v25  ;;  %v237_v7 = vpop.f32.mrf.mxu0  ;;  %v269_v43 = vpop.f32.mrf.mxu1 }
  0xed   :  { %v523_v45 = vadd.f32 %v853_v53, %v500_v31  ;;  %v505_v47 = vmul.f32 %v842_v39, %v358_v33  ;;  %v513_v35 = vmul.f32 %v492_v30, %v366_v34  ;;  %v356_v42 = vadd.f32 %v340_v17, %v237_v7 }
  0xee   :  { %v531_v46 = vadd.f32 %v853_v53, %v508_v32  ;;  %541 = vst [vmem:[%s942_s4 + $0x18] sm:$0xff] %v525_v36  ;;  %549 = vst [vmem:[%s942_s4 + $0x58] sm:$0xff] %v533_v41  ;;  %v364_v48 = vadd.f32 %v348_v18, %v269_v43  ;;  %v616_v11 = vpop.f32.mrf.mxu0  ;;  %v624_v49 = vpop.f32.mrf.mxu1 }
  0xef   :  { %539 = vst [vmem:[%s942_s4 + $0x8] sm:$0xff] %v523_v45  ;;  %v528_v39 = vadd.f32 %v853_v53, %v505_v47  ;;  %v536_v50 = vadd.f32 %v853_v53, %v513_v35  ;;  %v359_v51 = vadd.f32 %v616_v11, %v343_v28  ;;  %v367_v52 = vadd.f32 %v624_v49, %v351_v29 }
  0xf0   :  { %547 = vst [vmem:[%s942_s4 + $0x48] sm:$0xff] %v531_v46  ;;  %v503_v54 = vmul.f32 %v838_v37, %v356_v42  ;;  %v511_v55 = vmul.f32 %v859_v60, %v364_v48  ;;  %v240_v56 = vpop.f32.mrf.mxu0  ;;  %v272_v57 = vpop.f32.mrf.mxu1 }
  0xf1   :  { %544 = vst [vmem:[%s942_s4 + $0x30] sm:$0xff] %v528_v39  ;;  %552 = vst [vmem:[%s942_s4 + $0x70] sm:$0xff] %v536_v50  ;;  %v506_v58 = vmul.f32 %v844_v40, %v359_v51  ;;  %v514_v59 = vmul.f32 %v497_v1, %v367_v52  ;;  %v357_v61 = vadd.f32 %v341_v0, %v240_v56 }
  0xf2   :  { %v365_v62 = vadd.f32 %v349_v44, %v272_v57  ;;  %v526_v63 = vadd.f32 %v853_v53, %v503_v54  ;;  %v534_v37 = vadd.f32 %v853_v53, %v511_v55 }
  0xf3   :  { %v529_v60 = vadd.f32 %v853_v53, %v506_v58  ;;  %v537_v2 = vadd.f32 %v853_v53, %v514_v59  ;;  %v504_v4 = vmul.f32 %v840_v38, %v357_v61 }
  0xf4   :  { %v512_v5 = vmul.f32 %v487_v19, %v365_v62  ;;  %542 = vst [vmem:[%s942_s4 + $0x20] sm:$0xff] %v526_v63  ;;  %550 = vst [vmem:[%s942_s4 + $0x60] sm:$0xff] %v534_v37 }
  0xf5   :  { %545 = vst [vmem:[%s942_s4 + $0x38] sm:$0xff] %v529_v60  ;;  %553 = vst [vmem:[%s942_s4 + $0x78] sm:$0xff] %v537_v2  ;;  %v527_v40 = vadd.f32 %v853_v53, %v504_v4 }
  0xf6   :  { %v535_v38 = vadd.f32 %v853_v53, %v512_v5 }
  0xf7   :  { %543 = vst [vmem:[%s942_s4 + $0x28] sm:$0xff] %v527_v40 }
  0xf8   :  { %551 = vst [vmem:[%s942_s4 + $0x68] sm:$0xff] %v535_v38 }

// kernel: jnsgsl_forward.29
= control target key start
LH: loop header
LB: loop body
LE: loop exit
PB: predicated region body
PF: predicated region fallthrough
CT: control target
= control target key end

     0   :  { %v827_v2 = vmov 0   ;;  %s1070_s1 = inlined_call_operand.vmem [shape: bf16[128,128], index: 1, kind: input, shape index: {}]   ;;  %s1071_s0 = inlined_call_operand.vmem [shape: bf16[128,128], index: 0, kind: input, shape index: {}]   ;;  %s1072_s2 = inlined_call_operand.vmem [shape: f32[128,1], index: 2, kind: input, shape index: {}]   ;;  %s1073_s3 = inlined_call_operand.vmem [shape: f32[1,128], index: 3, kind: input, shape index: {}]   ;;  %s1074_s4 = inlined_call_operand.vmem [shape: bf16[128,128], index: 4, kind: output, shape index: {}]  }
   0x1   :  { %v856_v0 = vld [vmem:[%s1070_s1 + $0x38] sm:$0xff]   ;;  %v861_v1 = vld [vmem:[%s1070_s1 + $0x30] sm:$0xff]   ;;  %802 = vset.pattern.permute.xlu1 %v827_v2  ;;  %801 = vset.pattern.permute.xlu0 %v827_v2  ;;  %v866_v3 = vld [vmem:[%s1070_s1 + $0x28] sm:$0xff]  }
   0x2   :  { %752 = vmatprep.subr.bf16.mxu0 %v856_v0  ;;  %784 = vmatprep.subr.bf16.mxu1 %v856_v0  ;;  %v811_v4 = vld [vmem:[%s1071_s0] sm:$0xff]   ;;  %v892_v7 = vld [vmem:[%s1070_s1 + $0x18] sm:$0xff]   ;;  %v405_v8 = vld [vmem:[%s1072_s2 + $0x10] sm:$0xff]  ;;  %v346_v43 = vunpack.c.l.bf16 %v866_v3  ;;  %v347_v55 = vunpack.c.h.bf16 %v866_v3 }
   0x3   :  { %753 = vmatpush3.bf16.msra.mxu0 %v856_v0  ;;  %792 = vmatpush3.bf16.msra.mxu1 %v856_v0  ;;  %v812_v5 = vld [vmem:[%s1071_s0 + $0x20] sm:$0xff]   ;;  %v406_v10 = vld [vmem:[%s1072_s2 + $0x18] sm:$0xff]  ;;  %v910_v11 = vld [vmem:[%s1070_s1 + $0x10] sm:$0xff]  }
   0x4   :  { %754 = vmatprep.subr.bf16.mxu0 %v861_v1  ;;  %785 = vmatprep.subr.bf16.mxu1 %v861_v1  ;;  %v883_v6 = vld [vmem:[%s1070_s1 + $0x20] sm:$0xff]   ;;  %v404_v12 = vld [vmem:[%s1072_s2 + $0x8] sm:$0xff]  ;;  %v410_v16 = vld [vmem:[%s1072_s2 + $0x38] sm:$0xff] }
   0x5   :  { %768 = vmatprep.mubr.bf16.mxu0 %v811_v4  ;;  %776 = vmatprep.mubr.bf16.mxu1 %v812_v5  ;;  %v403_v9 = vld [vmem:[%s1072_s2] sm:$0xff]  ;;  %v408_v13 = vld [vmem:[%s1072_s2 + $0x28] sm:$0xff]  ;;  %v409_v18 = vld [vmem:[%s1072_s2 + $0x30] sm:$0xff]  ;;  %v344_v47 = vunpack.c.l.bf16 %v883_v6  ;;  %v345_v2 = vunpack.c.h.bf16 %v883_v6  ;;  %v342_v4 = vunpack.c.l.bf16 %v892_v7  ;;  %v350_v5 = vunpack.c.l.bf16 %v856_v0 }
   0x6   :  { %431 = vperm.xlu1 %802, %v405_v8   ;;  %421 = vperm.xlu0 %801, %v403_v9   ;;  %v925_v14 = vld [vmem:[%s1070_s1 + $0x8] sm:$0xff]   ;;  %v407_v15 = vld [vmem:[%s1072_s2 + $0x20] sm:$0xff]  ;;  %v414_v21 = vld [vmem:[%s1072_s2 + $0x58] sm:$0xff] }
   0x7   :  { %755 = vmatpush3.bf16.msra.mxu0 %v861_v1  ;;  %793 = vmatpush3.bf16.msra.mxu1 %v861_v1  ;;  %v940_v17 = vld [vmem:[%s1070_s1] sm:$0xff]   ;;  %v412_v19 = vld [vmem:[%s1072_s2 + $0x48] sm:$0xff]  ;;  %v413_v24 = vld [vmem:[%s1072_s2 + $0x50] sm:$0xff]  ;;  %v338_v42 = vunpack.c.l.bf16 %v925_v14  ;;  %v339_v54 = vunpack.c.h.bf16 %v925_v14 }
   0x8   :  { %756 = vmatprep.subr.bf16.mxu0 %v866_v3  ;;  %786 = vmatprep.subr.bf16.mxu1 %v866_v3  ;;  %v411_v20 = vld [vmem:[%s1072_s2 + $0x40] sm:$0xff]  ;;  %v813_v22 = vld [vmem:[%s1071_s0 + $0x8] sm:$0xff]   ;;  %v815_v25 = vld [vmem:[%s1071_s0 + $0x10] sm:$0xff]   ;;  %v336_v46 = vunpack.c.l.bf16 %v940_v17  ;;  %v337_v63 = vunpack.c.h.bf16 %v940_v17 }
   0x9   :  { %v814_v23 = vld [vmem:[%s1071_s0 + $0x28] sm:$0xff]   ;;  %v816_v26 = vld [vmem:[%s1071_s0 + $0x30] sm:$0xff]   ;;  %v415_v28 = vld [vmem:[%s1072_s2 + $0x60] sm:$0xff] }
   0xa   :  { %436 = vperm.xlu1 %802, %v406_v10   ;;  %426 = vperm.xlu0 %801, %v404_v12   ;;  %v416_v27 = vld [vmem:[%s1072_s2 + $0x68] sm:$0xff]  ;;  %v418_v29 = vld [vmem:[%s1072_s2 + $0x78] sm:$0xff]  ;;  %v417_v32 = vld [vmem:[%s1072_s2 + $0x70] sm:$0xff]  ;;  %v340_v12 = vunpack.c.l.bf16 %v910_v11 }
   0xb   :  { %757 = vmatpush3.bf16.msra.mxu0 %v866_v3  ;;  %794 = vmatpush3.bf16.msra.mxu1 %v866_v3  ;;  %v817_v30 = vld [vmem:[%s1071_s0 + $0x18] sm:$0xff]   ;;  %v1014_v60 = vld [vmem:[%s1073_s3] ss:$0 sm:$0xff] }
   0xc   :  { %758 = vmatprep.subr.bf16.mxu0 %v883_v6  ;;  %787 = vmatprep.subr.bf16.mxu1 %v883_v6  ;;  %v818_v31 = vld [vmem:[%s1071_s0 + $0x38] sm:$0xff]  }
   0xe   :  { %446 = vperm.xlu1 %802, %v408_v13   ;;  %441 = vperm.xlu0 %801, %v407_v15   ;;  %v348_v13 = vunpack.c.l.bf16 %v861_v1 }
   0xf   :  { %759 = vmatpush3.bf16.msra.mxu0 %v883_v6  ;;  %795 = vmatpush3.bf16.msra.mxu1 %v883_v6  ;;  %v351_v6 = vunpack.c.h.bf16 %v856_v0 }
  0x10   :  { %760 = vmatprep.subr.bf16.mxu0 %v892_v7  ;;  %788 = vmatprep.subr.bf16.mxu1 %v892_v7 }
  0x12   :  { %456 = vperm.xlu1 %802, %v410_v16   ;;  %451 = vperm.xlu0 %801, %v409_v18  }
  0x13   :  { %761 = vmatpush3.bf16.msra.mxu0 %v892_v7  ;;  %796 = vmatpush3.bf16.msra.mxu1 %v892_v7 }
  0x14   :  { %762 = vmatprep.subr.bf16.mxu0 %v910_v11  ;;  %789 = vmatprep.subr.bf16.mxu1 %v910_v11 }
  0x16   :  { %466 = vperm.xlu1 %802, %v412_v19   ;;  %461 = vperm.xlu0 %801, %v411_v20  }
  0x17   :  { %763 = vmatpush3.bf16.msra.mxu0 %v910_v11  ;;  %797 = vmatpush3.bf16.msra.mxu1 %v910_v11 }
  0x18   :  { %764 = vmatprep.subr.bf16.mxu0 %v925_v14  ;;  %790 = vmatprep.subr.bf16.mxu1 %v925_v14 }
  0x1a   :  { %476 = vperm.xlu1 %802, %v414_v21   ;;  %471 = vperm.xlu0 %801, %v413_v24   ;;  %v341_v21 = vunpack.c.h.bf16 %v910_v11 }
  0x1b   :  { %765 = vmatpush3.bf16.msra.mxu0 %v925_v14  ;;  %798 = vmatpush3.bf16.msra.mxu1 %v925_v14 }
  0x1c   :  { %766 = vmatprep.subr.bf16.mxu0 %v940_v17  ;;  %791 = vmatprep.subr.bf16.mxu1 %v940_v17 }
  0x1e   :  { %486 = vperm.xlu1 %802, %v416_v27   ;;  %481 = vperm.xlu0 %801, %v415_v28  }
  0x1f   :  { %767 = vmatpush3.bf16.msra.mxu0 %v940_v17  ;;  %799 = vmatpush3.bf16.msra.mxu1 %v940_v17  ;;  %v343_v17 = vunpack.c.h.bf16 %v892_v7 }
  0x22   :  { %769 = vmatmul.mubr.bf16.vlgmr.msra.gmra.mxu0 %v813_v22  ;;  %777 = vmatmul.mubr.bf16.vlgmr.msra.gmra.mxu1 %v814_v23  ;;  %v349_v22 = vunpack.c.h.bf16 %v861_v1 }
  0x23   :  { %772 = vmatprep.mubr.bf16.mxu0 %v815_v25  ;;  %780 = vmatprep.mubr.bf16.mxu1 %v816_v26 }
  0x24   :  { %496 = vperm.xlu1 %802, %v418_v29   ;;  %491 = vperm.xlu0 %801, %v417_v32  }
  0x2a   :  { %773 = vmatmul.mubr.bf16.gmra.mxu0 %v817_v30  ;;  %781 = vmatmul.mubr.bf16.gmra.mxu1 %v818_v31 }
  0x81   :  { %v422_v33 = vpop.permute.xlu0 %421  ;;  %v432_v34 = vpop.permute.xlu1 %431 }
  0x85   :  { %v427_v35 = vpop.permute.xlu0 %426  ;;  %v437_v36 = vpop.permute.xlu1 %436 }
  0x89   :  { %v997_v37 = vpop.permute.xlu0 %441  ;;  %v999_v38 = vpop.permute.xlu1 %446 }
  0x8d   :  { %v1001_v39 = vpop.permute.xlu0 %451  ;;  %v1003_v40 = vpop.permute.xlu1 %456 }
  0x91   :  { %v462_v41 = vpop.permute.xlu0 %461  ;;  %v467_v44 = vpop.permute.xlu1 %466 }
  0x95   :  { %v472_v45 = vpop.permute.xlu0 %471  ;;  %v477_v3 = vpop.permute.xlu1 %476 }
  0x99   :  { %v482_v8 = vpop.permute.xlu0 %481 }
  0xe2   :  { %v770_v48 = vpop.f32.mrf.mxu0  ;;  %v778_v49 = vpop.f32.mrf.mxu1 }
  0xe3   :  { %v354_v50 = vadd.f32 %v770_v48, %v338_v42  ;;  %v362_v51 = vadd.f32 %v778_v49, %v346_v43 }
  0xe4   :  { %v221_v52 = vpop.f32.mrf.mxu0  ;;  %v253_v53 = vpop.f32.mrf.mxu1 }
  0xe5   :  { %v501_v56 = vmul.f32 %v432_v34, %v354_v50  ;;  %v509_v57 = vmul.f32 %v472_v45, %v362_v51  ;;  %v352_v58 = vadd.f32 %v336_v46, %v221_v52  ;;  %v360_v59 = vadd.f32 %v344_v47, %v253_v53 }
  0xe6   :  { %v771_v61 = vpop.f32.mrf.mxu0  ;;  %v779_v62 = vpop.f32.mrf.mxu1 }
  0xe7   :  { %v499_v9 = vmul.f32 %v422_v33, %v352_v58  ;;  %v507_v10 = vmul.f32 %v462_v41, %v360_v59  ;;  %v355_v14 = vadd.f32 %v771_v61, %v339_v54  ;;  %v363_v15 = vadd.f32 %v779_v62, %v347_v55  ;;  %v492_v41 = vpop.permute.xlu0 %491 }
  0xe8   :  { %v224_v16 = vpop.f32.mrf.mxu0  ;;  %v256_v18 = vpop.f32.mrf.mxu1  ;;  %v524_v19 = vadd.f32 %v1014_v60, %v501_v56  ;;  %v532_v20 = vadd.f32 %v1014_v60, %v509_v57 }
  0xe9   :  { %v502_v23 = vmul.f32 %v437_v36, %v355_v14  ;;  %v510_v24 = vmul.f32 %v477_v3, %v363_v15  ;;  %v353_v25 = vadd.f32 %v337_v63, %v224_v16  ;;  %v361_v26 = vadd.f32 %v345_v2, %v256_v18  ;;  %v487_v36 = vpop.permute.xlu1 %486 }
  0xea   :  { %v774_v27 = vpop.f32.mrf.mxu0  ;;  %v782_v28 = vpop.f32.mrf.mxu1  ;;  %v522_v29 = vadd.f32 %v1014_v60, %v499_v9  ;;  %v530_v7 = vadd.f32 %v1014_v60, %v507_v10  ;;  %v540_v42 = vmax.f32 %v524_v19, 0.0  ;;  %v548_v43 = vmax.f32 %v532_v20, 0.0 }
  0xeb   :  { %v358_v30 = vadd.f32 %v774_v27, %v342_v4  ;;  %v366_v0 = vadd.f32 %v782_v28, %v350_v5  ;;  %v525_v31 = vadd.f32 %v1014_v60, %v502_v23  ;;  %v533_v32 = vadd.f32 %v1014_v60, %v510_v24 }
  0xec   :  { %v500_v33 = vmul.f32 %v427_v35, %v353_v25  ;;  %v508_v11 = vmul.f32 %v467_v44, %v361_v26  ;;  %v237_v34 = vpop.f32.mrf.mxu0  ;;  %v269_v1 = vpop.f32.mrf.mxu1  ;;  %v538_v53 = vmax.f32 %v522_v29, 0.0  ;;  %v546_v54 = vmax.f32 %v530_v7, 0.0 }
  0xed   :  { %v356_v45 = vadd.f32 %v340_v12, %v237_v34  ;;  %v364_v46 = vadd.f32 %v348_v13, %v269_v1  ;;  %v541_v47 = vmax.f32 %v525_v31, 0.0  ;;  %v549_v48 = vmax.f32 %v533_v32, 0.0  ;;  %v497_v3 = vpop.permute.xlu1 %496 }
  0xee   :  { %v523_v49 = vadd.f32 %v1014_v60, %v500_v33  ;;  %v531_v50 = vadd.f32 %v1014_v60, %v508_v11  ;;  %v775_v51 = vpop.f32.mrf.mxu0  ;;  %v783_v52 = vpop.f32.mrf.mxu1  ;;  %v505_v35 = vmul.f32 %v1001_v39, %v358_v30  ;;  %v513_v44 = vmul.f32 %v492_v41, %v366_v0 }
  0xef   :  { %v697_v55 = vpack.c.bf16 %v541_v47, %v540_v42  ;;  %v717_v56 = vpack.c.bf16 %v549_v48, %v548_v43  ;;  %v503_v62 = vmul.f32 %v997_v37, %v356_v45  ;;  %v511_v63 = vmul.f32 %v482_v8, %v364_v46 }
  0xf0   :  { %v539_v57 = vmax.f32 %v523_v49, 0.0  ;;  %v547_v58 = vmax.f32 %v531_v50, 0.0  ;;  %v240_v59 = vpop.f32.mrf.mxu0  ;;  %v272_v61 = vpop.f32.mrf.mxu1  ;;  %v359_v4 = vadd.f32 %v775_v51, %v343_v17  ;;  %v367_v5 = vadd.f32 %v783_v52, %v351_v6 }
  0xf1   :  { %729 = vst [vmem:[%s1074_s4 + $0x8] sm:$0xff] %v697_v55   ;;  %733 = vst [vmem:[%s1074_s4 + $0x28] sm:$0xff] %v717_v56   ;;  %v357_v9 = vadd.f32 %v341_v21, %v240_v59  ;;  %v365_v10 = vadd.f32 %v349_v22, %v272_v61  ;;  %v528_v37 = vadd.f32 %v1014_v60, %v505_v35 }
  0xf2   :  { %v692_v2 = vpack.c.bf16 %v539_v57, %v538_v53  ;;  %v712_v39 = vpack.c.bf16 %v547_v58, %v546_v54  ;;  %v536_v8 = vadd.f32 %v1014_v60, %v513_v44  ;;  %v506_v12 = vmul.f32 %v1003_v40, %v359_v4 }
  0xf3   :  { %v514_v13 = vmul.f32 %v497_v3, %v367_v5  ;;  %v526_v14 = vadd.f32 %v1014_v60, %v503_v62  ;;  %v534_v15 = vadd.f32 %v1014_v60, %v511_v63  ;;  %v504_v16 = vmul.f32 %v999_v38, %v357_v9 }
  0xf4   :  { %693 = vst [vmem:[%s1074_s4] sm:$0xff] %v692_v2   ;;  %732 = vst [vmem:[%s1074_s4 + $0x20] sm:$0xff] %v712_v39   ;;  %v512_v18 = vmul.f32 %v487_v36, %v365_v10  ;;  %v529_v17 = vadd.f32 %v1014_v60, %v506_v12  ;;  %v544_v21 = vmax.f32 %v528_v37, 0.0  ;;  %v552_v22 = vmax.f32 %v536_v8, 0.0 }
  0xf5   :  { %v537_v6 = vadd.f32 %v1014_v60, %v514_v13  ;;  %v527_v19 = vadd.f32 %v1014_v60, %v504_v16  ;;  %v542_v24 = vmax.f32 %v526_v14, 0.0  ;;  %v550_v25 = vmax.f32 %v534_v15, 0.0 }
  0xf6   :  { %v535_v20 = vadd.f32 %v1014_v60, %v512_v18  ;;  %v545_v23 = vmax.f32 %v529_v17, 0.0 }
  0xf7   :  { %v553_v40 = vmax.f32 %v537_v6, 0.0  ;;  %v543_v26 = vmax.f32 %v527_v19, 0.0 }
  0xf8   :  { %v551_v27 = vmax.f32 %v535_v20, 0.0  ;;  %v707_v28 = vpack.c.bf16 %v545_v23, %v544_v21 }
  0xf9   :  { %v727_v29 = vpack.c.bf16 %v553_v40, %v552_v22  ;;  %v702_v38 = vpack.c.bf16 %v543_v26, %v542_v24 }
  0xfa   :  { %v722_v7 = vpack.c.bf16 %v551_v27, %v550_v25  ;;  %731 = vst [vmem:[%s1074_s4 + $0x18] sm:$0xff] %v707_v28  }
  0xfb   :  { %735 = vst [vmem:[%s1074_s4 + $0x38] sm:$0xff] %v727_v29   ;;  %730 = vst [vmem:[%s1074_s4 + $0x10] sm:$0xff] %v702_v38  }
  0xfc   :  { %734 = vst [vmem:[%s1074_s4 + $0x30] sm:$0xff] %v722_v7  }

</bundles_post_ra>
